<compile_context>
chip_gen: v6e
topology: v6e:2x2x1
jax: 0.10.0
libtpu: 0.0.40
codegen_flags: <defaults>
</compile_context>

<pallas_src>
import numpy as np
import jax
import jax.numpy as jnp
from jax import lax
from jax.experimental import pallas as pl
from jax.experimental.pallas import tpu as pltpu

MXU_DTYPE = jnp.bfloat16                 # matmul-input dtype (f32 accumulation)


def _fused_line_kernel(x_ref, w_ref, b_ref, o_ref):
    """Full depth-chain of one conv line for one batch tile, activation in VMEM.

    x_ref : (TN, S, SCp)         NHWC activation with (W,C) flattened and
                                 zero-padded to SCp (=128k) lanes, f32
    w_ref : (depth, 3*SCp, SCp)  kh-folded block-Toeplitz weights, bf16
    b_ref : (depth, 1, SCp)      bias tiled over W (zero in pad lanes), f32
    o_ref : (TN, S, SCp)         lane-dense output, f32
    """
    TN, S, SCp = x_ref.shape
    depth = w_ref.shape[0]
    M = TN * S

    # Row-within-image index, used to zero the H halo after the sublane rolls
    # (row 0 has no h-1 neighbour, row S-1 has no h+1 neighbour).  Computed
    # once per grid step and hoisted out of the (unrolled) depth loop.
    h_idx = lax.broadcasted_iota(jnp.int32, (TN, S, SCp), 1).reshape(M, SCp)

    act = x_ref[...].reshape(M, SCp)          # free reshape (128-lane minor dim)
    for d in range(depth):                    # static depth -> fully unrolled
        # Shifted rows via XLU roll (otherwise-idle unit) + halo mask.
        down = jnp.where(h_idx != 0,
                         pltpu.roll(act, shift=1, axis=0), 0.0)        # row h-1 (kh=0)
        up = jnp.where(h_idx != S - 1,
                       pltpu.roll(act, shift=M - 1, axis=0), 0.0)      # row h+1 (kh=2)
        lhs = jnp.concatenate([down, act, up], axis=-1)                # (M, 3*SCp)
        acc = jnp.dot(lhs.astype(w_ref.dtype), w_ref[d],
                      preferred_element_type=jnp.float32)              # one MXU matmul/layer
        act = acc + b_ref[d]                                           # f32 bias add
    o_ref[...] = act.reshape(TN, S, SCp).astype(o_ref.dtype)


def _pack_line_weights(line_params, S, SCp):
    """Pack one line's HWIO conv weights into kh-folded block-Toeplitz matrices.

    Weight rows are ordered (kh, wi, ci) -> lanes of the concatenated LHS
    [row h-1 | row h | row h+1]; columns are (wo, co), zero in the pad lanes.
    """
    depth = len(line_params)
    C = int(line_params[0][0].shape[2])
    SC = S * C
    Wt = np.zeros((depth, 3 * SCp, SCp), np.float32)
    Bt = np.zeros((depth, 1, SCp), np.float32)
    for d, (w, b) in enumerate(line_params):
        w = np.asarray(w, np.float32)               # (3, 3, C_in, C_out) HWIO
        for kh in range(3):
            base = kh * SCp
            for kw in range(3):
                for wo in range(S):
                    wi = wo + kw - 1                # padding=1 along W
                    if 0 <= wi < S:
                        Wt[d, base + wi * C: base + (wi + 1) * C,
                           wo * C:(wo + 1) * C] = w[kh, kw]
        Bt[d, 0, :SC] = np.tile(np.asarray(b, np.float32), S)
    return Wt, Bt


def _vmem_budgets():
    """Generation-aware (vmem_limit_bytes, per-step working-set budget)."""
    phys = 64 * 1024 * 1024                         # conservative default (v7x per-core)
    try:
        info = pltpu.get_tpu_info()
        phys = int(getattr(info, "vmem_capacity_bytes", phys)) or phys
    except Exception:
        pass
    limit = min((phys * 3) // 4, 96 * 1024 * 1024)  # v5e/v6e: 96 MiB, v7x: 48 MiB
    budget = min(phys // 2, 64 * 1024 * 1024)       # v5e/v6e: 64 MiB, v7x: 32 MiB
    return limit, budget


def _choose_batch_tile(N, S, SCp, depth, budget):
    """Largest batch tile (divisor of N) whose working set fits `budget`.

    Starting from N and only shrinking when the budget forces it keeps
    M = TN*S (the MXU row extent) as large as N allows."""
    up8 = lambda v: -(-v // 8) * 8
    def est(tn):
        x_blk = tn * up8(S) * SCp * 4                 # f32 input tile
        o_blk = tn * up8(S) * SCp * 4                 # f32 output tile
        w_blk = depth * up8(3 * SCp) * SCp * 2        # bf16 weights (single-buffered)
        b_blk = depth * 8 * SCp * 4                   # f32 bias
        interm = 10 * tn * up8(S) * SCp * 4           # rolls / lhs / acc headroom
        return 2 * (x_blk + o_blk) + w_blk + b_blk + interm
    tn = N
    while tn > 1 and est(tn) > budget:
        tn -= 1
        while N % tn:
            tn -= 1
    return tn


def _call_kernel(x_flat, Wt, Bt, *, width, N, S, SCp, depth, TN, vmem_limit,
                 single_buffer_weights):
    wkw = {"pipeline_mode": pl.Buffered(1)} if single_buffer_weights else {}
    w_spec = pl.BlockSpec((None, depth, 3 * SCp, SCp), lambda i, j: (i, 0, 0, 0), **wkw)
    b_spec = pl.BlockSpec((None, depth, 1, SCp), lambda i, j: (i, 0, 0, 0), **wkw)
    return pl.pallas_call(
        _fused_line_kernel,
        out_shape=jax.ShapeDtypeStruct((width, N, S, SCp), jnp.float32),
        grid=(width, N // TN),
        in_specs=[
            pl.BlockSpec((TN, S, SCp), lambda i, j: (j, 0, 0)),
            w_spec,
            b_spec,
        ],
        out_specs=pl.BlockSpec((None, TN, S, SCp), lambda i, j: (i, j, 0, 0)),
        compiler_params=pltpu.CompilerParams(
            dimension_semantics=("parallel", "parallel"),
            vmem_limit_bytes=vmem_limit,
        ),
    )(x_flat, Wt, Bt)


def split_conv_forward(x_nchw, params):
    """Forward of SplitConvNetwork: tuple of `width` outputs, each (n, c, s, s)."""
    width = len(params)
    depth = len(params[0])
    N, C, S, _ = x_nchw.shape
    SC = S * C
    SCp = max(128, -(-SC // 128) * 128)             # lane dim padded to >= 128

    # NCHW -> NHWC with (W, C) flattened into the lane dim, zero-padded to SCp.
    x_flat = jnp.transpose(x_nchw, (0, 2, 3, 1)).reshape(N, S, SC)
    x_flat = jnp.pad(x_flat, ((0, 0), (0, 0), (0, SCp - SC)))

    # Pre-pack weights (kh-folded block-Toeplitz, bf16) and biases (f32).
    Wts, Bts = zip(*(_pack_line_weights(line, S, SCp) for line in params))
    Wt = jnp.asarray(np.stack(Wts), MXU_DTYPE)      # (width, depth, 3*SCp, SCp)
    Bt = jnp.asarray(np.stack(Bts), jnp.float32)    # (width, depth, 1, SCp)

    vmem_limit, tile_budget = _vmem_budgets()
    TN = _choose_batch_tile(N, S, SCp, depth, tile_budget)

    kw = dict(width=width, N=N, S=S, SCp=SCp, depth=depth, TN=TN,
              vmem_limit=vmem_limit)
    try:
        out = _call_kernel(x_flat, Wt, Bt, single_buffer_weights=True, **kw)
    except Exception:
        # Fallback if BlockSpec pipeline_mode / Buffered(1) is unavailable:
        # default double-buffered weights (slightly more VMEM, same result).
        out = _call_kernel(x_flat, Wt, Bt, single_buffer_weights=False, **kw)

    # Strip lane padding and return to NCHW (torch semantics).  Downstream
    # consumers that want NHWC can skip this transpose entirely.
    out = out[..., :SC].reshape(width, N, S, S, C).transpose(0, 1, 4, 2, 3)
    return tuple(out[i] for i in range(width))


def init_params(key, depth, width, c):
    """Deterministic init matching nn.Conv2d shapes: per line, `depth` convs with
    HWIO weight (3,3,c,c) and bias (c,), Uniform(-1/sqrt(fan_in), +)."""
    fan_in = c * 3 * 3
    bound = 1.0 / (fan_in ** 0.5)
    params = []
    for _ in range(width):
        line = []
        for _ in range(depth):
            key, kw_, kb_ = jax.random.split(key, 3)
            w = jax.random.uniform(kw_, (3, 3, c, c), jnp.float32, -bound, bound)
            b = jax.random.uniform(kb_, (c,), jnp.float32, -bound, bound)
            line.append((w, b))
        params.append(line)
    return params


def ref_forward(x_nchw, params, mxu_dtype=None):
    """Pure-JAX reference. mxu_dtype=None -> full f32; else bf16-matched math."""
    x = jnp.transpose(x_nchw, (0, 2, 3, 1))
    outs = []
    for line in params:
        h = x
        for (w, b) in line:
            hm = h if mxu_dtype is None else h.astype(mxu_dtype)
            wm = w if mxu_dtype is None else w.astype(mxu_dtype)
            h = lax.conv_general_dilated(
                hm, wm, window_strides=(1, 1), padding="SAME",
                dimension_numbers=("NHWC", "HWIO", "NHWC"),
                preferred_element_type=jnp.float32,
            ) + b
        outs.append(jnp.transpose(h, (0, 3, 1, 2)))
    return tuple(outs)


if __name__ == "__main__":
    depth, width = 2, 2
    n, c, s = 2, 4, 16

    key = jax.random.PRNGKey(0)
    key, kx = jax.random.split(key)
    x = jax.random.normal(kx, (n, c, s, s), jnp.float32)       # NCHW, like torch
    params = init_params(key, depth, width, c)

    outs = jax.block_until_ready(split_conv_forward(x, params))

    refs_f32 = ref_forward(x, params, mxu_dtype=None)
    refs_b16 = ref_forward(x, params, mxu_dtype=MXU_DTYPE)

    assert len(outs) == width
    for o, r16, r32 in zip(outs, refs_b16, refs_f32):
        assert o.shape == (n, c, s, s)
        assert jnp.allclose(o, r16, atol=2e-3, rtol=2e-3), "mismatch vs bf16-matched ref"
        assert jnp.allclose(o, r32, atol=5e-2, rtol=5e-2), "mismatch vs f32 ref"

    print("KERNEL_OK")
</pallas_src>

<mosaic_0001>
module attributes {stable_mosaic.version = 11 : i64} {
  func.func @_fused_line_kernel(%arg0: i32, %arg1: i32, %arg2: memref<2x16x128xf32, #tpu.memory_space<vmem>>, %arg3: memref<1x2x384x128xbf16, #tpu.memory_space<vmem>>, %arg4: memref<1x2x1x128xf32, #tpu.memory_space<vmem>>, %arg5: memref<1x2x16x128xf32, #tpu.memory_space<vmem>>) attributes {dimension_semantics = [#tpu.dimension_semantics<parallel>, #tpu.dimension_semantics<parallel>], iteration_bounds = array<i64: 2, 1>, scalar_prefetch = 0 : i64, scratch_operands = 0 : i64, tpu.core_type = #tpu.core_type<tc>, window_params = [{transform_indices = @transform_0, window_bounds = array<i64: 2, 16, 128>}, {pipeline_mode = #tpu.pipeline_mode<synchronous>, transform_indices = @transform_1, window_bounds = array<i64: 1, 2, 384, 128>}, {pipeline_mode = #tpu.pipeline_mode<synchronous>, transform_indices = @transform_2, window_bounds = array<i64: 1, 2, 1, 128>}, {transform_indices = @transform_3, window_bounds = array<i64: 1, 2, 16, 128>}]} {
    %0 = tpu.iota {dimensions = array<i32: 1>} : vector<2x16x128xi32>
    %1 = vector.shape_cast %0 : vector<2x16x128xi32> to vector<32x128xi32>
    %c0 = arith.constant 0 : index
    %c0_0 = arith.constant 0 : index
    %c0_1 = arith.constant 0 : index
    %2 = vector.load %arg2[%c0, %c0_0, %c0_1] : memref<2x16x128xf32, #tpu.memory_space<vmem>>, vector<2x16x128xf32>
    %3 = vector.shape_cast %2 : vector<2x16x128xf32> to vector<32x128xf32>
    %c0_i32 = arith.constant 0 : i32
    %4 = vector.broadcast %c0_i32 : i32 to vector<32x128xi32>
    %5 = arith.cmpi ne, %1, %4 : vector<32x128xi32>
    %c1_i32 = arith.constant 1 : i32
    %6 = tpu.dynamic_rotate %3 by %c1_i32 dim 0 : vector<32x128xf32>, i32 -> vector<32x128xf32>
    %cst = arith.constant 0.000000e+00 : f32
    %7 = vector.broadcast %cst : f32 to vector<32x128xf32>
    %8 = arith.select %5, %6, %7 : vector<32x128xi1>, vector<32x128xf32>
    %c15_i32 = arith.constant 15 : i32
    %9 = vector.broadcast %c15_i32 : i32 to vector<32x128xi32>
    %10 = arith.cmpi ne, %1, %9 : vector<32x128xi32>
    %c31_i32 = arith.constant 31 : i32
    %11 = tpu.dynamic_rotate %3 by %c31_i32 dim 0 : vector<32x128xf32>, i32 -> vector<32x128xf32>
    %cst_2 = arith.constant 0.000000e+00 : f32
    %12 = vector.broadcast %cst_2 : f32 to vector<32x128xf32>
    %13 = arith.select %10, %11, %12 : vector<32x128xi1>, vector<32x128xf32>
    %14 = tpu.concatenate %8, %3, %13 in 1 : vector<32x128xf32>, vector<32x128xf32>, vector<32x128xf32> -> vector<32x384xf32>
    %15 = arith.truncf %14 : vector<32x384xf32> to vector<32x384xbf16>
    %c0_3 = arith.constant 0 : index
    %c0_4 = arith.constant 0 : index
    %c0_5 = arith.constant 0 : index
    %c0_6 = arith.constant 0 : index
    %16 = vector.load %arg3[%c0_3, %c0_4, %c0_5, %c0_6] : memref<1x2x384x128xbf16, #tpu.memory_space<vmem>>, vector<1x1x384x128xbf16>
    %17 = vector.shape_cast %16 : vector<1x1x384x128xbf16> to vector<384x128xbf16>
    %cst_7 = arith.constant dense<0.000000e+00> : vector<32x128xf32>
    %18 = tpu.matmul %15, %17, %cst_7 {dimension_numbers = #tpu.dot_dimension_numbers<[1], [0], [0], [1], [0, 0, 1, 1], [], []>} : vector<32x384xbf16>, vector<384x128xbf16>, vector<32x128xf32> -> vector<32x128xf32>
    %c0_8 = arith.constant 0 : index
    %c0_9 = arith.constant 0 : index
    %c0_10 = arith.constant 0 : index
    %c0_11 = arith.constant 0 : index
    %19 = vector.load %arg4[%c0_8, %c0_9, %c0_10, %c0_11] : memref<1x2x1x128xf32, #tpu.memory_space<vmem>>, vector<1x1x1x128xf32>
    %20 = vector.shape_cast %19 : vector<1x1x1x128xf32> to vector<1x128xf32>
    %21 = vector.broadcast %20 : vector<1x128xf32> to vector<32x128xf32>
    %22 = arith.addf %18, %21 : vector<32x128xf32>
    %c0_i32_12 = arith.constant 0 : i32
    %23 = vector.broadcast %c0_i32_12 : i32 to vector<32x128xi32>
    %24 = arith.cmpi ne, %1, %23 : vector<32x128xi32>
    %c1_i32_13 = arith.constant 1 : i32
    %25 = tpu.dynamic_rotate %22 by %c1_i32_13 dim 0 : vector<32x128xf32>, i32 -> vector<32x128xf32>
    %cst_14 = arith.constant 0.000000e+00 : f32
    %26 = vector.broadcast %cst_14 : f32 to vector<32x128xf32>
    %27 = arith.select %24, %25, %26 : vector<32x128xi1>, vector<32x128xf32>
    %c15_i32_15 = arith.constant 15 : i32
    %28 = vector.broadcast %c15_i32_15 : i32 to vector<32x128xi32>
    %29 = arith.cmpi ne, %1, %28 : vector<32x128xi32>
    %c31_i32_16 = arith.constant 31 : i32
    %30 = tpu.dynamic_rotate %22 by %c31_i32_16 dim 0 : vector<32x128xf32>, i32 -> vector<32x128xf32>
    %cst_17 = arith.constant 0.000000e+00 : f32
    %31 = vector.broadcast %cst_17 : f32 to vector<32x128xf32>
    %32 = arith.select %29, %30, %31 : vector<32x128xi1>, vector<32x128xf32>
    %33 = tpu.concatenate %27, %22, %32 in 1 : vector<32x128xf32>, vector<32x128xf32>, vector<32x128xf32> -> vector<32x384xf32>
    %34 = arith.truncf %33 : vector<32x384xf32> to vector<32x384xbf16>
    %c0_18 = arith.constant 0 : index
    %c1 = arith.constant 1 : index
    %c0_19 = arith.constant 0 : index
    %c0_20 = arith.constant 0 : index
    %35 = vector.load %arg3[%c0_18, %c1, %c0_19, %c0_20] : memref<1x2x384x128xbf16, #tpu.memory_space<vmem>>, vector<1x1x384x128xbf16>
    %36 = vector.shape_cast %35 : vector<1x1x384x128xbf16> to vector<384x128xbf16>
    %cst_21 = arith.constant dense<0.000000e+00> : vector<32x128xf32>
    %37 = tpu.matmul %34, %36, %cst_21 {dimension_numbers = #tpu.dot_dimension_numbers<[1], [0], [0], [1], [0, 0, 1, 1], [], []>} : vector<32x384xbf16>, vector<384x128xbf16>, vector<32x128xf32> -> vector<32x128xf32>
    %c0_22 = arith.constant 0 : index
    %c1_23 = arith.constant 1 : index
    %c0_24 = arith.constant 0 : index
    %c0_25 = arith.constant 0 : index
    %38 = vector.load %arg4[%c0_22, %c1_23, %c0_24, %c0_25] : memref<1x2x1x128xf32, #tpu.memory_space<vmem>>, vector<1x1x1x128xf32>
    %39 = vector.shape_cast %38 : vector<1x1x1x128xf32> to vector<1x128xf32>
    %40 = vector.broadcast %39 : vector<1x128xf32> to vector<32x128xf32>
    %41 = arith.addf %37, %40 : vector<32x128xf32>
    %42 = vector.shape_cast %41 : vector<32x128xf32> to vector<2x16x128xf32>
    %c0_26 = arith.constant 0 : index
    %c0_27 = arith.constant 0 : index
    %c0_28 = arith.constant 0 : index
    %c0_29 = arith.constant 0 : index
    %43 = vector.load %arg5[%c0_26, %c0_27, %c0_28, %c0_29] : memref<1x2x16x128xf32, #tpu.memory_space<vmem>>, vector<1x2x16x128xf32>
    %44 = vector.shape_cast %43 : vector<1x2x16x128xf32> to vector<2x16x128xf32>
    %45 = vector.shape_cast %42 : vector<2x16x128xf32> to vector<1x2x16x128xf32>
    tpu.vector_store %arg5[%c0_26, %c0_27, %c0_28, %c0_29], %45 {strides = array<i32>} : memref<1x2x16x128xf32, #tpu.memory_space<vmem>>, vector<1x2x16x128xf32>,
    return
  }
  func.func @transform_0(%arg0: i32, %arg1: i32) -> (i32, i32, i32) {
    %c0_i32 = arith.constant 0 : i32
    %c0_i32_0 = arith.constant 0 : i32
    %c0_i32_1 = arith.constant 0 : i32
    return %arg1, %c0_i32, %c0_i32_0 : i32, i32, i32
  }
  func.func @transform_1(%arg0: i32, %arg1: i32) -> (i32, i32, i32, i32) {
    %c0_i32 = arith.constant 0 : i32
    %c0_i32_0 = arith.constant 0 : i32
    %c0_i32_1 = arith.constant 0 : i32
    %c0_i32_2 = arith.constant 0 : i32
    return %arg0, %c0_i32, %c0_i32_0, %c0_i32_1 : i32, i32, i32, i32
  }
  func.func @transform_2(%arg0: i32, %arg1: i32) -> (i32, i32, i32, i32) {
    %c0_i32 = arith.constant 0 : i32
    %c0_i32_0 = arith.constant 0 : i32
    %c0_i32_1 = arith.constant 0 : i32
    %c0_i32_2 = arith.constant 0 : i32
    return %arg0, %c0_i32, %c0_i32_0, %c0_i32_1 : i32, i32, i32, i32
  }
  func.func @transform_3(%arg0: i32, %arg1: i32) -> (i32, i32, i32, i32) {
    %c0_i32 = arith.constant 0 : i32
    %c0_i32_0 = arith.constant 0 : i32
    %c0_i32_1 = arith.constant 0 : i32
    return %arg0, %arg1, %c0_i32, %c0_i32_0 : i32, i32, i32, i32
  }
}

module attributes {stable_mosaic.version = 11 : i64} {
  func.func @_fused_line_kernel(%arg0: i32, %arg1: i32, %arg2: memref<2x16x128xf32, #tpu.memory_space<vmem>>, %arg3: memref<1x2x384x128xbf16, #tpu.memory_space<vmem>>, %arg4: memref<1x2x1x128xf32, #tpu.memory_space<vmem>>, %arg5: memref<1x2x16x128xf32, #tpu.memory_space<vmem>>) attributes {dimension_semantics = [#tpu.dimension_semantics<parallel>, #tpu.dimension_semantics<parallel>], iteration_bounds = array<i64: 2, 1>, scalar_prefetch = 0 : i64, scratch_operands = 0 : i64, tpu.core_type = #tpu.core_type<tc>, window_params = [{transform_indices = @transform_0, window_bounds = array<i64: 2, 16, 128>}, {transform_indices = @transform_1, window_bounds = array<i64: 1, 2, 384, 128>}, {transform_indices = @transform_2, window_bounds = array<i64: 1, 2, 1, 128>}, {transform_indices = @transform_3, window_bounds = array<i64: 1, 2, 16, 128>}]} {
    %0 = tpu.iota {dimensions = array<i32: 1>} : vector<2x16x128xi32>
    %1 = vector.shape_cast %0 : vector<2x16x128xi32> to vector<32x128xi32>
    %c0 = arith.constant 0 : index
    %c0_0 = arith.constant 0 : index
    %c0_1 = arith.constant 0 : index
    %2 = vector.load %arg2[%c0, %c0_0, %c0_1] : memref<2x16x128xf32, #tpu.memory_space<vmem>>, vector<2x16x128xf32>
    %3 = vector.shape_cast %2 : vector<2x16x128xf32> to vector<32x128xf32>
    %c0_i32 = arith.constant 0 : i32
    %4 = vector.broadcast %c0_i32 : i32 to vector<32x128xi32>
    %5 = arith.cmpi ne, %1, %4 : vector<32x128xi32>
    %c1_i32 = arith.constant 1 : i32
    %6 = tpu.dynamic_rotate %3 by %c1_i32 dim 0 : vector<32x128xf32>, i32 -> vector<32x128xf32>
    %cst = arith.constant 0.000000e+00 : f32
    %7 = vector.broadcast %cst : f32 to vector<32x128xf32>
    %8 = arith.select %5, %6, %7 : vector<32x128xi1>, vector<32x128xf32>
    %c15_i32 = arith.constant 15 : i32
    %9 = vector.broadcast %c15_i32 : i32 to vector<32x128xi32>
    %10 = arith.cmpi ne, %1, %9 : vector<32x128xi32>
    %c31_i32 = arith.constant 31 : i32
    %11 = tpu.dynamic_rotate %3 by %c31_i32 dim 0 : vector<32x128xf32>, i32 -> vector<32x128xf32>
    %cst_2 = arith.constant 0.000000e+00 : f32
    %12 = vector.broadcast %cst_2 : f32 to vector<32x128xf32>
    %13 = arith.select %10, %11, %12 : vector<32x128xi1>, vector<32x128xf32>
    %14 = tpu.concatenate %8, %3, %13 in 1 : vector<32x128xf32>, vector<32x128xf32>, vector<32x128xf32> -> vector<32x384xf32>
    %15 = arith.truncf %14 : vector<32x384xf32> to vector<32x384xbf16>
    %c0_3 = arith.constant 0 : index
    %c0_4 = arith.constant 0 : index
    %c0_5 = arith.constant 0 : index
    %c0_6 = arith.constant 0 : index
    %16 = vector.load %arg3[%c0_3, %c0_4, %c0_5, %c0_6] : memref<1x2x384x128xbf16, #tpu.memory_space<vmem>>, vector<1x1x384x128xbf16>
    %17 = vector.shape_cast %16 : vector<1x1x384x128xbf16> to vector<384x128xbf16>
    %cst_7 = arith.constant dense<0.000000e+00> : vector<32x128xf32>
    %18 = tpu.matmul %15, %17, %cst_7 {dimension_numbers = #tpu.dot_dimension_numbers<[1], [0], [0], [1], [0, 0, 1, 1], [], []>} : vector<32x384xbf16>, vector<384x128xbf16>, vector<32x128xf32> -> vector<32x128xf32>
    %c0_8 = arith.constant 0 : index
    %c0_9 = arith.constant 0 : index
    %c0_10 = arith.constant 0 : index
    %c0_11 = arith.constant 0 : index
    %19 = vector.load %arg4[%c0_8, %c0_9, %c0_10, %c0_11] : memref<1x2x1x128xf32, #tpu.memory_space<vmem>>, vector<1x1x1x128xf32>
    %20 = vector.shape_cast %19 : vector<1x1x1x128xf32> to vector<1x128xf32>
    %21 = vector.broadcast %20 : vector<1x128xf32> to vector<32x128xf32>
    %22 = arith.addf %18, %21 : vector<32x128xf32>
    %c0_i32_12 = arith.constant 0 : i32
    %23 = vector.broadcast %c0_i32_12 : i32 to vector<32x128xi32>
    %24 = arith.cmpi ne, %1, %23 : vector<32x128xi32>
    %c1_i32_13 = arith.constant 1 : i32
    %25 = tpu.dynamic_rotate %22 by %c1_i32_13 dim 0 : vector<32x128xf32>, i32 -> vector<32x128xf32>
    %cst_14 = arith.constant 0.000000e+00 : f32
    %26 = vector.broadcast %cst_14 : f32 to vector<32x128xf32>
    %27 = arith.select %24, %25, %26 : vector<32x128xi1>, vector<32x128xf32>
    %c15_i32_15 = arith.constant 15 : i32
    %28 = vector.broadcast %c15_i32_15 : i32 to vector<32x128xi32>
    %29 = arith.cmpi ne, %1, %28 : vector<32x128xi32>
    %c31_i32_16 = arith.constant 31 : i32
    %30 = tpu.dynamic_rotate %22 by %c31_i32_16 dim 0 : vector<32x128xf32>, i32 -> vector<32x128xf32>
    %cst_17 = arith.constant 0.000000e+00 : f32
    %31 = vector.broadcast %cst_17 : f32 to vector<32x128xf32>
    %32 = arith.select %29, %30, %31 : vector<32x128xi1>, vector<32x128xf32>
    %33 = tpu.concatenate %27, %22, %32 in 1 : vector<32x128xf32>, vector<32x128xf32>, vector<32x128xf32> -> vector<32x384xf32>
    %34 = arith.truncf %33 : vector<32x384xf32> to vector<32x384xbf16>
    %c0_18 = arith.constant 0 : index
    %c1 = arith.constant 1 : index
    %c0_19 = arith.constant 0 : index
    %c0_20 = arith.constant 0 : index
    %35 = vector.load %arg3[%c0_18, %c1, %c0_19, %c0_20] : memref<1x2x384x128xbf16, #tpu.memory_space<vmem>>, vector<1x1x384x128xbf16>
    %36 = vector.shape_cast %35 : vector<1x1x384x128xbf16> to vector<384x128xbf16>
    %cst_21 = arith.constant dense<0.000000e+00> : vector<32x128xf32>
    %37 = tpu.matmul %34, %36, %cst_21 {dimension_numbers = #tpu.dot_dimension_numbers<[1], [0], [0], [1], [0, 0, 1, 1], [], []>} : vector<32x384xbf16>, vector<384x128xbf16>, vector<32x128xf32> -> vector<32x128xf32>
    %c0_22 = arith.constant 0 : index
    %c1_23 = arith.constant 1 : index
    %c0_24 = arith.constant 0 : index
    %c0_25 = arith.constant 0 : index
    %38 = vector.load %arg4[%c0_22, %c1_23, %c0_24, %c0_25] : memref<1x2x1x128xf32, #tpu.memory_space<vmem>>, vector<1x1x1x128xf32>
    %39 = vector.shape_cast %38 : vector<1x1x1x128xf32> to vector<1x128xf32>
    %40 = vector.broadcast %39 : vector<1x128xf32> to vector<32x128xf32>
    %41 = arith.addf %37, %40 : vector<32x128xf32>
    %42 = vector.shape_cast %41 : vector<32x128xf32> to vector<2x16x128xf32>
    %c0_26 = arith.constant 0 : index
    %c0_27 = arith.constant 0 : index
    %c0_28 = arith.constant 0 : index
    %c0_29 = arith.constant 0 : index
    %43 = vector.load %arg5[%c0_26, %c0_27, %c0_28, %c0_29] : memref<1x2x16x128xf32, #tpu.memory_space<vmem>>, vector<1x2x16x128xf32>
    %44 = vector.shape_cast %43 : vector<1x2x16x128xf32> to vector<2x16x128xf32>
    %45 = vector.shape_cast %42 : vector<2x16x128xf32> to vector<1x2x16x128xf32>
    tpu.vector_store %arg5[%c0_26, %c0_27, %c0_28, %c0_29], %45 {strides = array<i32>} : memref<1x2x16x128xf32, #tpu.memory_space<vmem>>, vector<1x2x16x128xf32>,
    return
  }
  func.func @transform_0(%arg0: i32, %arg1: i32) -> (i32, i32, i32) {
    %c0_i32 = arith.constant 0 : i32
    %c0_i32_0 = arith.constant 0 : i32
    %c0_i32_1 = arith.constant 0 : i32
    return %arg1, %c0_i32, %c0_i32_0 : i32, i32, i32
  }
  func.func @transform_1(%arg0: i32, %arg1: i32) -> (i32, i32, i32, i32) {
    %c0_i32 = arith.constant 0 : i32
    %c0_i32_0 = arith.constant 0 : i32
    %c0_i32_1 = arith.constant 0 : i32
    %c0_i32_2 = arith.constant 0 : i32
    return %arg0, %c0_i32, %c0_i32_0, %c0_i32_1 : i32, i32, i32, i32
  }
  func.func @transform_2(%arg0: i32, %arg1: i32) -> (i32, i32, i32, i32) {
    %c0_i32 = arith.constant 0 : i32
    %c0_i32_0 = arith.constant 0 : i32
    %c0_i32_1 = arith.constant 0 : i32
    %c0_i32_2 = arith.constant 0 : i32
    return %arg0, %c0_i32, %c0_i32_0, %c0_i32_1 : i32, i32, i32, i32
  }
  func.func @transform_3(%arg0: i32, %arg1: i32) -> (i32, i32, i32, i32) {
    %c0_i32 = arith.constant 0 : i32
    %c0_i32_0 = arith.constant 0 : i32
    %c0_i32_1 = arith.constant 0 : i32
    return %arg0, %arg1, %c0_i32, %c0_i32_0 : i32, i32, i32, i32
  }
}

</mosaic_0001>

<bundles_post_ra>
// kernel: tpu_custom_call.1
= control target key start
LH: loop header
LB: loop body
LE: loop exit
PB: predicated region body
PF: predicated region fallthrough
CT: control target
= control target key end

     0   :  { %s1856_s0 = inlined_call_operand.hbm [shape: f32[2,16,128], index: 0, kind: input, shape index: {}]   ;;  %s1857_s1 = inlined_call_operand.hbm [shape: bf16[2,2,384,128], index: 1, kind: input, shape index: {}]   ;;  %s1858_s2 = inlined_call_operand.hbm [shape: f32[2,2,1,128], index: 2, kind: input, shape index: {}]   ;;  %s1859_s3 = inlined_call_operand.hbm [shape: f32[2,2,16,128], index: 3, kind: output, shape index: {}]  }
   0x1   :  { %1868 = sst [smem:[#allocation13_spill]] %s1857_s1 }
   0x2   :  { %8 = vsyncpa [#allocation3], 0 }
   0x3   :  { %9 = vsyncpa [#allocation6], 0 }
   0x4   :  { %10 = vsyncpa [#allocation4], 0 }
   0x5   :  { %12 = vsyncpa [#allocation4 + $0x1], 0  ;;  %s1567_s12 = smov 0   ;;  %s1569_s13 = smov 0  }
   0x6   :  { %s1571_s14 = smov 0   ;;  %s1573_s15 = smov 0  }
   0x7   :  { %s1575_s16 = smov 0   ;;  %s1577_s17 = smov 0  }
   0x8 LB: > { %s1023_s18 = sadd.s32 4294967295, %s1532_s17   ;;  %s1024_s19 = sadd.s32 4294967294, %s1532_s17   ;;  %s1532_s17 = sphi %s1577_s17, %s18_s17   ;;  %s1528_s16 = sphi %s1575_s16, %s1893_s16   ;;  %s1524_s15 = sphi %s1573_s15, %s1892_s15   ;;  %s1520_s14 = sphi %s1571_s14, %s1891_s14   ;;  %s1516_s13 = sphi %s1569_s13, %s1890_s13   ;;  %s1512_s12 = sphi %s1567_s12, %s1889_s12  }
   0x9   : > { %s30_s20 = sadd.s32 1, %s1528_s16  ;;  %s63_s21 = sadd.s32 1, %s1520_s14 }
   0xa   : > { %p32_p0 = scmp.ge.s32.totalorder %s30_s20, 2  ;;  %p76_p1 = scmp.ne.s32.totalorder %s1516_s13, %s1512_s12 }
   0xb   : > { %p1603_p2 = scmp.eq.s32.totalorder %s1023_s18, 0  ;;  %p127_p3 = scmp.ne.s32.totalorder %s1520_s14, %s1516_s13 }
   0xc   : > { %s1895_s20 = smov (%p32_p0, %s30_s20), 0  ;;  %p128_p5 = scmp.eq.s32.totalorder %s1023_s18, 1 }
   0xd   : > { %s1869_s22 = scalar_select %p1603_p2, 1, 0 }
   0xe   : > { %1870 = sst [smem:[#allocation12_spill]] %s1895_s20  ;;  %p1613_p4 = por %p1603_p2, %p76_p1 }
   0xf   : > { %s60_s24 = ssub.s32 %s1528_s16, %s1895_s20  ;;  %p134_p6 = scmp.eq.s32.totalorder %s1024_s19, 1 }
  0x10   : > { %s1871_s23 = scalar_select %p1613_p4, 1, 0 }
  0x11   : > { %p61_p7 = scmp.eq.s32.totalorder %s60_s24, 0  ;;  %p1619_p8 = por %p128_p5, %p127_p3 }
  0x12   : > { %p1623_p9 = por %p134_p6, %p76_p1  ;;  %p1025_p10 = scmp.ge.s32.totalorder %s1532_s17, 1 }
  0x13   : > { %s1872_s25 = scalar_select %p1619_p8, 1, 0 }
  0x14   : > { %s1873_s26 = scalar_select %p1623_p9, 1, 0 }
  0x15   : > { %s1629_s27 = scalar_select %p61_p7, %s1520_s14, %s63_s21  }
  0x16   : > { %p141_p11 = scmp.lt.s32.totalorder %s1532_s17, 3  ;;  %s1230_s28 = smul.u32 6144, %s1524_s15 }
  0x17   : > { %s1534_s30 = smov [#allocation5]   ;;  %s1875_s1 = sld [smem:[#allocation13_spill]] }
  0x18   : > { %p1633_p12 = pnand %p1025_p10, %p141_p11  ;;  %s173_s4 = sshll.u32 %s1534_s30, 4  ;;  %s1642_s4 = int_to_ptr.vmem [resolvable:$true] %s173_s4 }
  0x19   : > { %s1112_s8 = sshll.u32 %s1524_s15, 5  ;;  %s1535_s10 = smov [#allocation2]  }
  0x1a   : > { %s1874_s29 = scalar_select %p1633_p12, 1, 0 }
  0x1b   : > { %p1241_p13 = pneg %p1633_p12  ;;  %s157_s11 = sshll.u32 %s1535_s10, 4  ;;  %s1659_s11 = int_to_ptr.vmem [resolvable:$true] %s157_s11 }
  0x1d   : > { %s1640_s7 = scalar_lea.hbm %s1875_s1, %s1230_s28  ;;  %p1649_p0 = pnand %p1241_p13, %p1613_p4 }
  0x1e   : > { %p1655_p1 = pnand %p1241_p13, %p1603_p2  ;;  %s1366_s19 = scalar_lea.hbm %s1640_s7, 6144 }
  0x1f   : > { %p1367_p3 = scmp.ne.s32.totalorder %s1640_s7, %s1366_s19  ;;  %p1368_p5 = pneg %p1649_p0 }
  0x20   : > { %s1877_s18 = scalar_select %p1655_p1, 1, 0 }
  0x21   : > { %p1369_p6 = pnand %p1368_p5, %p1367_p3  ;;  %s1371_s28 = scalar_lea.hbm %s1875_s1, 12288 }
  0x22   : > { %p1372_p10 = scmp.lt.s32.totalorder %s1640_s7, %s1875_s1  ;;  %p1373_p11 = scmp.lt.s32.totalorder %s1371_s28, %s1366_s19 }
  0x23   : > { %p1370_p7 = pneg %p1369_p6 }
  0x24   : > { %p1374_p13 = por %p1373_p11, %p1372_p10 }
  0x26   : > { %p1375_p9 = pnand %p1374_p13, %p1370_p7 }
  0x28   : > { %1378 = shalt.err (!%p1375_p9)
}
  0x29   : > { %s1379_s6 = scalar_lea.vmem %s1642_s4, 6144  ;;  %p1387_p4 = scmp.lt.s32.totalorder %s1642_s4, %s1642_s4 }
  0x2a   : > { %p1380_p8 = scmp.ne.s32.totalorder %s1642_s4, %s1379_s6  ;;  %p1388_p2 = scmp.lt.s32.totalorder %s1379_s6, %s1379_s6 }
  0x2c   : > { %p1382_p3 = pnand %p1380_p8, %p1368_p5  ;;  %p1389_p12 = por %p1388_p2, %p1387_p4 }
  0x2e   : > { %p1383_p6 = pneg %p1382_p3 }
  0x30   : > { %p1390_p1 = pnand %p1389_p12, %p1383_p6 }
  0x32   : > { %1393 = shalt.err (!%p1390_p1)
}
  0x33   : > { %s1536_s10 = smov 64   ;;  %s1537_s19 = smov 4  }
  0x34   : > { %1247 = dma.hbm_to_vmem [thread:$0]  (!%p1649_p0), %s1640_s7, 6144, %s1642_s4, [#allocation6], %s1536_s10, %s1536_s10, %s1537_s19  }
  0x35   : > { %s1691_s28 = scalar_lea.hbm %s1858_s2, %s1112_s8  ;;  %p1878_p2 = scmp.ne.s32.totalorder %s1877_s18, 0 }
  0x36   : > { %s1405_s30 = scalar_lea.vmem %s1659_s11, 512  ;;  %p1413_p1 = scmp.lt.s32.totalorder %s1659_s11, %s1659_s11 }
  0x37   : > { %p1396_p4 = pneg %p1878_p2  ;;  %p1406_p8 = scmp.ne.s32.totalorder %s1659_s11, %s1405_s30 }
  0x38   : > { %p1414_p7 = scmp.lt.s32.totalorder %s1405_s30, %s1405_s30 }
  0x39   : > { %p1408_p9 = pnand %p1406_p8, %p1396_p4 }
  0x3a   : > { %p1415_p10 = por %p1414_p7, %p1413_p1 }
  0x3b   : > { %p1409_p12 = pneg %p1408_p9 }
  0x3d   : > { %p1416_p11 = pnand %p1415_p10, %p1409_p12 }
  0x3f   : > { %1419 = shalt.err (!%p1416_p11)
}
  0x40   : > { %s1538_s5 = smov 128   ;;  %s1539_s4 = smov 8  }
  0x41   : > { %1244 = dma.hbm_to_vmem [thread:$0]  (!%p1878_p2), %s1856_s0, 512, %s1659_s11, [#allocation3], %s1538_s5, %s1538_s5, %s1539_s4  }
  0x42   : > { %s1540_s6 = smov [#allocation7]   ;;  %s1420_s19 = scalar_lea.hbm %s1691_s28, 32 }
  0x43   : > { %s189_s10 = sshll.u32 %s1540_s6, 4  ;;  %p1421_p13 = scmp.ne.s32.totalorder %s1691_s28, %s1420_s19  ;;  %s190_s10 = int_to_ptr.vmem [resolvable:$true] %s189_s10 }
  0x44   : > { %s1425_s30 = scalar_lea.hbm %s1858_s2, 64  ;;  %p1426_p4 = scmp.lt.s32.totalorder %s1691_s28, %s1858_s2 }
  0x45   : > { %p1423_p3 = pnand %p1421_p13, %p1368_p5  ;;  %p1427_p8 = scmp.lt.s32.totalorder %s1425_s30, %s1420_s19 }
  0x47   : > { %p1424_p6 = pneg %p1423_p3  ;;  %p1428_p9 = por %p1427_p8, %p1426_p4 }
  0x49   : > { %p1429_p2 = pnand %p1428_p9, %p1424_p6 }
  0x4b   : > { %1432 = shalt.err (!%p1429_p2)
}
  0x4c   : > { %s1433_s11 = scalar_lea.vmem %s190_s10, 32  ;;  %p1441_p10 = scmp.lt.s32.totalorder %s190_s10, %s190_s10 }
  0x4d   : > { %p1434_p12 = scmp.ne.s32.totalorder %s190_s10, %s1433_s11  ;;  %p1442_p11 = scmp.lt.s32.totalorder %s1433_s11, %s1433_s11 }
  0x4f   : > { %p1436_p1 = pnand %p1434_p12, %p1368_p5  ;;  %p1443_p13 = por %p1442_p11, %p1441_p10 }
  0x51   : > { %p1437_p7 = pneg %p1436_p1 }
  0x53   : > { %p1444_p3 = pnand %p1443_p13, %p1437_p7 }
  0x55   : > { %1447 = shalt.err (!%p1444_p3)
}
  0x56   : > { %s1541_s18 = smov 16   ;;  %s1542_s1 = smov 1  }
  0x57   : > { %1250 = dma.hbm_to_vmem [thread:$0]  (!%p1649_p0), %s1691_s28, 32, %s190_s10, [#allocation6], %s1541_s18, %s1541_s18, %s1542_s1  }
  0x58   : > { %p1879_p6 = scmp.ne.s32.totalorder %s1874_s29, 0 }
  0x59   : > { %p1880_p4 = scmp.ne.s32.totalorder (!%p1879_p6), %s1869_s22, 0 }
  0x5a   : > { %205 = sbr.rel (%p1879_p6) target bundleno = 577 (0x241), region = 32 }
  0x5f   : > { %1499 = dma.done.wait (%p1880_p4), [#allocation3], 512  }
  0x60   : > { %1501 = vsyncadd (%p1880_p4), [#allocation3], 4294966784  ;;  %p1881_p5 = scmp.ne.s32.totalorder %s1871_s23, 0 }
  0x62   : > { %1503 = dma.done.wait (%p1881_p5), [#allocation6], 6176  }
  0x63   : > { %1505 = vsyncadd (%p1881_p5), [#allocation6], 4294961120  ;;  %v1318_v0 = vld [vmem:[#allocation5 + $0x78] sm:$0xff]   ;;  %v1320_v2 = vld [vmem:[#allocation5 + $0x70] sm:$0xff]   ;;  %v235_v15 = vlaneseq  ;;  %vm1543_vm4 = vmmov 1   ;;  %s229_s20 = sand.u32 1, %s1516_s13  }
  0x64   : > { %v1319_v1 = vld [vmem:[#allocation5 + $0x38] sm:$0xff]   ;;  %1114 = vmatprep.subr.bf16.mxu0 %v1318_v0  ;;  %v1322_v4 = vld [vmem:[#allocation5 + $0x30] sm:$0xff]   ;;  %v1323_v5 = vld [vmem:[#allocation5 + $0x68] sm:$0xff]   ;;  %s1032_s22 = sshll.u32 %s229_s20, 5  ;;  %s1113_s9 = sshll.u32 %s1524_s15, 9 }
  0x65   : > { %1115 = vmatpush3.bf16.msra.mxu0 %v1319_v1  ;;  %v1321_v3 = vld [vmem:[#allocation5 + $0xb8] sm:$0xff]   ;;  %v1324_v6 = vld [vmem:[#allocation5 + $0xb0] sm:$0xff]   ;;  %v1325_v7 = vld [vmem:[#allocation5 + $0x28] sm:$0xff]   ;;  %v1733_v19 = vshrl.u32 %v235_v15, 7  ;;  %s231_s23 = scalar_lea.vmem [#allocation8], %s1032_s22  ;;  %s1807_s4 = scalar_lea.hbm %s1859_s3, %s1113_s9 }
  0x66   : > { %1116 = vmatprep.subr.bf16.mxu0 %v1320_v2  ;;  %1190 = vmatprep.subr.bf16.mxu1 %v1321_v3  ;;  %v1326_v8 = vld [vmem:[#allocation5 + $0x60] sm:$0xff]   ;;  %v1327_v9 = vld [vmem:[#allocation5 + $0xa8] sm:$0xff]   ;;  %v1329_v11 = vld [vmem:[#allocation5 + $0x58] sm:$0xff]   ;;  %s925_s29 = sshll.u32 %s231_s23, 4  ;;  %s1811_s7 = scalar_lea.sflag [#allocation4], %s229_s20  ;;  %s1802_s29 = int_to_ptr.vmem [resolvable:$true] %s925_s29 }
  0x67   : > { %1191 = vmatpush3.bf16.msra.mxu1 %v1321_v3  ;;  %v1328_v10 = vld [vmem:[#allocation5 + $0x20] sm:$0xff]   ;;  %v1331_v13 = vld [vmem:[#allocation5 + $0x18] sm:$0xff]   ;;  %v1332_v16 = vld [vmem:[#allocation5 + $0x50] sm:$0xff]   ;;  %v237_v22 = vadd.s32 8, %v1733_v19  ;;  %vm242_vm0 = vcmp.ne.s32.totalorder %v1733_v19, 0  ;;  %vm248_vm1 = vcmp.lt.s32.totalorder %v1733_v19, 1 }
  0x68   : > { %1192 = vmatprep.subr.bf16.mxu1 %v1324_v6  ;;  %v1330_v12 = vld [vmem:[#allocation5 + $0xa0] sm:$0xff]   ;;  %v1333_v14 = vld [vmem:[#allocation5 + $0x98] sm:$0xff]   ;;  %v1334_v17 = vld [vmem:[#allocation5 + $0x10] sm:$0xff]   ;;  %vm263_vm2 = vcmp.lt.s32.totalorder %v1733_v19, 7  ;;  %s1448_s8 = scalar_lea.vmem %s1802_s29, 512  ;;  %p1886_p8 = scmp.ne.s32.totalorder %s1872_s25, 0 }
  0x69   : > { %1117 = vmatpush3.bf16.msra.mxu0 %v1322_v4  ;;  %v1336_v18 = vld [vmem:[#allocation5 + $0x90] sm:$0xff]   ;;  %v1335_v20 = vld [vmem:[#allocation5 + $0x48] sm:$0xff]   ;;  %v1338_v23 = vld [vmem:[#allocation5 + $0x40] sm:$0xff]   ;;  %vm258_vm3 = vcmp.ne.s32.totalorder %v237_v22, 15  ;;  %p1449_p0 = scmp.ne.s32.totalorder %s1802_s29, %s1448_s8  ;;  %s1544_s15 = smov [#allocation8]  }
  0x6a   : > { %1118 = vmatprep.subr.bf16.mxu0 %v1323_v5  ;;  %v1337_v21 = vld [vmem:[#allocation5 + $0x8] sm:$0xff]   ;;  %v238_v25 = vld [vmem:[#allocation2] sm:$0xff]  ;;  %v241_v27 = vld [vmem:[#allocation2 + $0x18] sm:$0xff]  ;;  %s1452_s6 = sshll.u32 %s1544_s15, 4  ;;  %s1453_s6 = int_to_ptr.vmem [resolvable:$false] %s1452_s6 }
  0x6b   : > { %1193 = vmatpush3.bf16.msra.mxu1 %v1324_v6  ;;  %v1339_v24 = vld [vmem:[#allocation5 + $0x88] sm:$0xff]   ;;  %v244_v28 = vrot.slane %v238_v25, 7  ;;  %v259_v30 = vrot.slane %v238_v25, 1  ;;  %v1340_v32 = vld [vmem:[#allocation5] sm:$0xff]   ;;  %v247_v34 = vrot.slane %v241_v27, 7  ;;  %v240_v35 = vld [vmem:[#allocation2 + $0x10] sm:$0xff]  ;;  %p1450_p9 = pnand %p1449_p0, %p1886_p8  ;;  %p1455_p12 = scmp.lt.s32.totalorder %s1802_s29, %s1453_s6 }
  0x6c   : > { %1194 = vmatprep.subr.bf16.mxu1 %v1327_v9  ;;  %v239_v26 = vld [vmem:[#allocation2 + $0x8] sm:$0xff]  ;;  %vm1741_vm5 = vmpackc.low %vm1543_vm4, %vm242_vm0  ;;  %v261_v37 = vrot.slane %v240_v35, 1  ;;  %v262_v39 = vrot.slane %v241_v27, 1  ;;  %v1341_v42 = vld [vmem:[#allocation5 + $0x80] sm:$0xff]   ;;  %v246_v51 = vrot.slane %v240_v35, 7  ;;  %v276_v52 = vpack.c.bf16 %v241_v27, %v240_v35  ;;  %s1454_s10 = scalar_lea.vmem %s1453_s6, 1024 }
  0x6d   : > { %1119 = vmatpush3.bf16.msra.mxu0 %v1325_v7  ;;  %v245_v29 = vrot.slane %v239_v26, 7  ;;  %v260_v31 = vrot.slane %v239_v26, 1  ;;  %v273_v33 = vpack.c.bf16 %v239_v26, %v238_v25  ;;  %v252_v41 = vsel %vm248_vm1, %v247_v34, %v244_v28  ;;  %v1342_v44 = vld [vmem:[#allocation5 + $0x138] sm:$0xff]   ;;  %vm1754_vm6 = vmpackc.low %vm258_vm3, %vm1543_vm4  ;;  %v1345_v54 = vld [vmem:[#allocation5 + $0x130] sm:$0xff]   ;;  %p1451_p2 = pneg %p1450_p9  ;;  %p1456_p1 = scmp.lt.s32.totalorder %s1454_s10, %s1448_s8 }
  0x6e   : > { %1120 = vmatprep.subr.bf16.mxu0 %v1326_v8  ;;  %v264_v48 = vsel %vm263_vm2, %v261_v37, %v262_v39  ;;  %v267_v49 = vsel %vm263_vm2, %v262_v39, %v259_v30  ;;  %v1343_v50 = vld [vmem:[#allocation5 + $0x178] sm:$0xff]   ;;  %v1346_v56 = vld [vmem:[#allocation5 + $0x170] sm:$0xff]   ;;  %v249_v58 = vsel %vm248_vm1, %v246_v51, %v247_v34  ;;  %v1348_v61 = vld [vmem:[#allocation5 + $0x128] sm:$0xff]  }
  0x6f   : > { %1195 = vmatpush3.bf16.msra.mxu1 %v1327_v9  ;;  %v266_v38 = vsel %vm263_vm2, %v259_v30, %v260_v31  ;;  %v251_v40 = vsel %vm248_vm1, %v244_v28, %v245_v29  ;;  %509 = vmatprep.mubr.bf16.mxu0 %v273_v33  ;;  %v265_v43 = vsel %vm263_vm2, %v260_v31, %v261_v37  ;;  %v1344_v53 = vld [vmem:[#allocation5 + $0xf8] sm:$0xff]   ;;  %v1347_v57 = vld [vmem:[#allocation5 + $0xf0] sm:$0xff]   ;;  %v1349_v62 = vld [vmem:[#allocation5 + $0x168] sm:$0xff]   ;;  %p1457_p7 = por %p1456_p1, %p1455_p12 }
  0x70   : > { %1196 = vmatprep.subr.bf16.mxu1 %v1330_v12  ;;  %v1065_v46 = vpack.c.bf16 %v265_v43, %v266_v38  ;;  %v1059_v47 = vpack.c.bf16 %v251_v40, %v252_v41  ;;  %v1068_v55 = vpack.c.bf16 %v267_v49, %v264_v48  ;;  %v250_v59 = vsel %vm248_vm1, %v245_v29, %v246_v51  ;;  %v1350_v63 = vld [vmem:[#allocation5 + $0xe8] sm:$0xff]   ;;  %v1351_v0 = vld [vmem:[#allocation5 + $0x120] sm:$0xff]   ;;  %v1354_v3 = vld [vmem:[#allocation5 + $0x118] sm:$0xff]  }
  0x71   : > { %1121 = vmatpush3.bf16.msra.mxu0 %v1328_v10  ;;  %v1062_v60 = vpack.c.bf16 %v249_v58, %v250_v59  ;;  %v1352_v1 = vld [vmem:[#allocation5 + $0x160] sm:$0xff]   ;;  %v1355_v4 = vld [vmem:[#allocation5 + $0x158] sm:$0xff]   ;;  %v1357_v6 = vld [vmem:[#allocation5 + $0x110] sm:$0xff]   ;;  %p1458_p10 = pnand %p1457_p7, %p1451_p2 }
  0x72   : > { %1122 = vmatprep.subr.bf16.mxu0 %v1329_v11  ;;  %1206 = vmatprep.mubr.msk.bf16.mxu1 %vm1754_vm6, %v1065_v46  ;;  %v1353_v2 = vld [vmem:[#allocation5 + $0xe0] sm:$0xff]   ;;  %v1356_v5 = vld [vmem:[#allocation5 + $0xd8] sm:$0xff]   ;;  %v1358_v7 = vld [vmem:[#allocation5 + $0x150] sm:$0xff]  }
  0x73   : > { %1197 = vmatpush3.bf16.msra.mxu1 %v1330_v12  ;;  %v1359_v8 = vld [vmem:[#allocation5 + $0xd0] sm:$0xff]   ;;  %v1360_v9 = vld [vmem:[#allocation5 + $0x108] sm:$0xff]   ;;  %v1363_v12 = vld [vmem:[#allocation5 + $0x100] sm:$0xff]  }
  0x74   : > { %1198 = vmatprep.subr.bf16.mxu1 %v1333_v14  ;;  %v1361_v10 = vld [vmem:[#allocation5 + $0x148] sm:$0xff]  }
  0x75   : > { %1123 = vmatpush3.bf16.msra.mxu0 %v1331_v13  ;;  %v1362_v11 = vld [vmem:[#allocation5 + $0xc8] sm:$0xff]   ;;  %v1364_v13 = vld [vmem:[#allocation5 + $0x140] sm:$0xff]  }
  0x76   : > { %1124 = vmatprep.subr.bf16.mxu0 %v1332_v16 }
  0x77   : > { %1199 = vmatpush3.bf16.msra.mxu1 %v1333_v14  ;;  %v1365_v14 = vld [vmem:[#allocation5 + $0xc0] sm:$0xff]  }
  0x78   : > { %1200 = vmatprep.subr.bf16.mxu1 %v1336_v18 }
  0x79   : > { %1125 = vmatpush3.bf16.msra.mxu0 %v1334_v17 }
  0x7a   : > { %1126 = vmatprep.subr.bf16.mxu0 %v1335_v20 }
  0x7b   : > { %1201 = vmatpush3.bf16.msra.mxu1 %v1336_v18 }
  0x7c   : > { %1202 = vmatprep.subr.bf16.mxu1 %v1339_v24 }
  0x7d   : > { %1127 = vmatpush3.bf16.msra.mxu0 %v1337_v21  ;;  %v1033_v21 = vld [vmem:[#allocation7] ss:$0 sm:$0xff] }
  0x7e   : > { %1128 = vmatprep.subr.bf16.mxu0 %v1338_v23 }
  0x7f   : > { %1203 = vmatpush3.bf16.msra.mxu1 %v1339_v24 }
  0x80   : > { %1204 = vmatprep.subr.bf16.mxu1 %v1341_v42 }
  0x81   : > { %1129 = vmatpush3.bf16.msra.mxu0 %v1340_v32 }
  0x82   : > { %1152 = vmatprep.subr.bf16.mxu0 %v1342_v44 }
  0x83   : > { %1205 = vmatpush3.bf16.msra.mxu1 %v1341_v42 }
  0x84   : > { %1060 = vmatmul.mubr.msk.bf16.vlgmr.msra.gmra.mxu0 %vm1741_vm5, %v1059_v47  ;;  %1210 = vmatprep.subr.bf16.mxu1 %v1343_v50 }
  0x85   : > { %517 = vmatprep.mubr.bf16.mxu0 %v276_v52  ;;  %1153 = vmatpush3.bf16.msra.mxu0 %v1344_v53 }
  0x86   : > { %1207 = vmatmul.mubr.msk.bf16.vlgmr.msra.gmra.mxu1 %vm1754_vm6, %v1068_v55  ;;  %1154 = vmatprep.subr.bf16.mxu0 %v1345_v54 }
  0x87   : > { %1211 = vmatpush3.bf16.msra.mxu1 %v1343_v50 }
  0x88   : > { %1212 = vmatprep.subr.bf16.mxu1 %v1346_v56 }
  0x89   : > { %1155 = vmatpush3.bf16.msra.mxu0 %v1347_v57 }
  0x8a   : > { %1156 = vmatprep.subr.bf16.mxu0 %v1348_v61 }
  0x8b   : > { %1213 = vmatpush3.bf16.msra.mxu1 %v1346_v56 }
  0x8c   : > { %1063 = vmatmul.mubr.msk.bf16.gmra.mxu0 %vm1741_vm5, %v1062_v60  ;;  %1214 = vmatprep.subr.bf16.mxu1 %v1349_v62 }
  0x8d   : > { %1157 = vmatpush3.bf16.msra.mxu0 %v1350_v63 }
  0x8e   : > { %1158 = vmatprep.subr.bf16.mxu0 %v1351_v0 }
  0x8f   : > { %1215 = vmatpush3.bf16.msra.mxu1 %v1349_v62 }
  0x90   : > { %1216 = vmatprep.subr.bf16.mxu1 %v1352_v1 }
  0x91   : > { %1159 = vmatpush3.bf16.msra.mxu0 %v1353_v2 }
  0x92   : > { %1160 = vmatprep.subr.bf16.mxu0 %v1354_v3 }
  0x93   : > { %1217 = vmatpush3.bf16.msra.mxu1 %v1352_v1 }
  0x94   : > { %1218 = vmatprep.subr.bf16.mxu1 %v1355_v4 }
  0x95   : > { %1161 = vmatpush3.bf16.msra.mxu0 %v1356_v5 }
  0x96   : > { %1162 = vmatprep.subr.bf16.mxu0 %v1357_v6 }
  0x97   : > { %1219 = vmatpush3.bf16.msra.mxu1 %v1355_v4  ;;  %v1070_v4 = vld [vmem:[#allocation7 + $0x1] ss:$0 sm:$0xff] }
  0x98   : > { %1220 = vmatprep.subr.bf16.mxu1 %v1358_v7 }
  0x99   : > { %1163 = vmatpush3.bf16.msra.mxu0 %v1359_v8 }
  0x9a   : > { %1164 = vmatprep.subr.bf16.mxu0 %v1360_v9 }
  0x9b   : > { %1221 = vmatpush3.bf16.msra.mxu1 %v1358_v7 }
  0x9c   : > { %1222 = vmatprep.subr.bf16.mxu1 %v1361_v10 }
  0x9d   : > { %1165 = vmatpush3.bf16.msra.mxu0 %v1362_v11 }
  0x9e   : > { %1166 = vmatprep.subr.bf16.mxu0 %v1363_v12 }
  0x9f   : > { %1223 = vmatpush3.bf16.msra.mxu1 %v1361_v10 }
  0xa0   : > { %1224 = vmatprep.subr.bf16.mxu1 %v1364_v13 }
  0xa1   : > { %1167 = vmatpush3.bf16.msra.mxu0 %v1365_v14 }
  0xa3   : > { %1225 = vmatpush3.bf16.msra.mxu1 %v1364_v13 }
 0x144   : > { %v1130_v15 = vpop.f32.mrf.mxu0 }
 0x146   : > { %v1131_v16 = vpop.f32.mrf.mxu0  ;;  %v1208_v18 = vpop.f32.mrf.mxu1 }
 0x147   : > { %v1132_v17 = vadd.f32 %v1131_v16, %v1130_v15 }
 0x148   : > { %v1133_v20 = vpop.f32.mrf.mxu0  ;;  %v560_v22 = vpop.f32.mrf.mxu1 }
 0x149   : > { %v512_v25 = vadd.f32 %v1132_v17, %v1033_v21 }
 0x14a   : > { %v1134_v23 = vpop.f32.mrf.mxu0  ;;  %v1209_v26 = vpop.f32.mrf.mxu1 }
 0x14b   : > { %v1135_v24 = vadd.f32 %v1134_v23, %v1133_v20  ;;  %v561_v31 = vadd.f32 %v560_v22, %v512_v25 }
 0x14c   : > { %v1136_v27 = vpop.f32.mrf.mxu0  ;;  %v563_v29 = vpop.f32.mrf.mxu1 }
 0x14d   : > { %v515_v28 = vadd.f32 %v1135_v24, %v1033_v21  ;;  %v587_v42 = vrot.slane %v561_v31, 1  ;;  %v575_v51 = vrot.slane %v561_v31, 7 }
 0x14e   : > { %v1137_v30 = vpop.f32.mrf.mxu0 }
 0x14f   : > { %v1138_v32 = vadd.f32 %v1137_v30, %v1136_v27  ;;  %v564_v33 = vadd.f32 %v563_v29, %v515_v28 }
 0x150   : > { %v1139_v34 = vpop.f32.mrf.mxu0 }
 0x151   : > { %v520_v35 = vadd.f32 %v1138_v32, %v1033_v21  ;;  %v600_v37 = vpack.c.bf16 %v564_v33, %v561_v31  ;;  %v588_v40 = vrot.slane %v564_v33, 1  ;;  %v576_v46 = vrot.slane %v564_v33, 7 }
 0x152   : > { %v1140_v38 = vpop.f32.mrf.mxu0 }
 0x153   : > { %v569_v39 = vadd.f32 %v1208_v18, %v520_v35  ;;  %v1141_v41 = vadd.f32 %v1140_v38, %v1139_v34  ;;  %838 = vmatprep.mubr.bf16.mxu0 %v600_v37  ;;  %v593_v49 = vsel %vm263_vm2, %v587_v42, %v588_v40  ;;  %v581_v54 = vsel %vm248_vm1, %v575_v51, %v576_v46 }
 0x155   : > { %v589_v43 = vrot.slane %v569_v39, 1  ;;  %v523_v44 = vadd.f32 %v1141_v41, %v1033_v21  ;;  %v577_v61 = vrot.slane %v569_v39, 7 }
 0x157   : > { %v572_v47 = vadd.f32 %v1209_v26, %v523_v44  ;;  %v592_v48 = vsel %vm263_vm2, %v588_v40, %v589_v43  ;;  %v580_v63 = vsel %vm248_vm1, %v576_v46, %v577_v61 }
 0x158   : > { %v1102_v50 = vpack.c.bf16 %v592_v48, %v593_v49 }
 0x159   : > { %v578_v52 = vrot.slane %v572_v47, 7  ;;  %v590_v53 = vrot.slane %v572_v47, 1  ;;  %v603_v60 = vpack.c.bf16 %v572_v47, %v569_v39 }
 0x15a   : > { %1226 = vmatprep.mubr.msk.bf16.mxu1 %vm1754_vm6, %v1102_v50 }
 0x15b   : > { %v582_v55 = vsel %vm248_vm1, %v578_v52, %v575_v51  ;;  %v591_v56 = vsel %vm263_vm2, %v589_v43, %v590_v53  ;;  %v594_v57 = vsel %vm263_vm2, %v590_v53, %v587_v42  ;;  %v579_v62 = vsel %vm248_vm1, %v577_v61, %v578_v52 }
 0x15c   : > { %v1096_v58 = vpack.c.bf16 %v581_v54, %v582_v55  ;;  %v1105_v59 = vpack.c.bf16 %v594_v57, %v591_v56  ;;  %v1099_v0 = vpack.c.bf16 %v579_v62, %v580_v63 }
 0x15e   : > { %1097 = vmatmul.mubr.msk.bf16.vlgmr.msra.gmra.mxu0 %vm1741_vm5, %v1096_v58  ;;  %1227 = vmatmul.mubr.msk.bf16.vlgmr.msra.gmra.mxu1 %vm1754_vm6, %v1105_v59 }
 0x15f   : > { %846 = vmatprep.mubr.bf16.mxu0 %v603_v60 }
 0x166   : > { %1100 = vmatmul.mubr.msk.bf16.gmra.mxu0 %vm1741_vm5, %v1099_v0 }
 0x21e   : > { %v1168_v1 = vpop.f32.mrf.mxu0  ;;  %v1228_v2 = vpop.f32.mrf.mxu1 }
 0x220   : > { %v1169_v3 = vpop.f32.mrf.mxu0  ;;  %v889_v5 = vpop.f32.mrf.mxu1 }
 0x221   : > { %v1170_v45 = vadd.f32 %v1169_v3, %v1168_v1 }
 0x222   : > { %v1171_v6 = vpop.f32.mrf.mxu0  ;;  %v1229_v8 = vpop.f32.mrf.mxu1 }
 0x223   : > { %v841_v7 = vadd.f32 %v1170_v45, %v1070_v4 }
 0x224   : > { %v1172_v9 = vpop.f32.mrf.mxu0  ;;  %v892_v12 = vpop.f32.mrf.mxu1 }
 0x225   : > { %v890_v10 = vadd.f32 %v889_v5, %v841_v7  ;;  %v1173_v19 = vadd.f32 %v1172_v9, %v1171_v6 }
 0x226   : > { %v1174_v11 = vpop.f32.mrf.mxu0 }
 0x227   : > { %904 = vst [vmem:[%s231_s23] sm:$0xff] %v890_v10  ;;  %v844_v36 = vadd.f32 %v1173_v19, %v1070_v4 }
 0x228   : > { %v1175_v13 = vpop.f32.mrf.mxu0 }
 0x229   : > { %v893_v14 = vadd.f32 %v892_v12, %v844_v36  ;;  %v1176_v15 = vadd.f32 %v1175_v13, %v1174_v11 }
 0x22a   : > { %v1177_v16 = vpop.f32.mrf.mxu0 }
 0x22b   : > { %905 = vst [vmem:[%s231_s23 + $0x8] sm:$0xff] %v893_v14  ;;  %v849_v17 = vadd.f32 %v1176_v15, %v1070_v4 }
 0x22c   : > { %v1178_v18 = vpop.f32.mrf.mxu0 }
 0x22d   : > { %v898_v20 = vadd.f32 %v1228_v2, %v849_v17  ;;  %v1179_v21 = vadd.f32 %v1178_v18, %v1177_v16 }
 0x22f   : > { %906 = vst [vmem:[%s231_s23 + $0x10] sm:$0xff] %v898_v20  ;;  %v852_v22 = vadd.f32 %v1179_v21, %v1070_v4 }
 0x231   : > { %v901_v23 = vadd.f32 %v1229_v8, %v852_v22 }
 0x233   : > { %907 = vst [vmem:[%s231_s23 + $0x18] sm:$0xff] %v901_v23 }
 0x234   : > { %1461 = shalt.err (!%p1458_p10)
}
 0x235   : > { %s1462_s19 = scalar_lea.hbm %s1807_s4, 512  ;;  %s1466_s30 = scalar_lea.hbm %s1859_s3, 1024 }
 0x236   : > { %p1463_p11 = scmp.ne.s32.totalorder %s1807_s4, %s1462_s19  ;;  %p1467_p6 = scmp.lt.s32.totalorder %s1807_s4, %s1859_s3 }
 0x237   : > { %p1468_p4 = scmp.lt.s32.totalorder %s1466_s30, %s1462_s19 }
 0x238   : > { %p1464_p13 = pnand %p1463_p11, %p1886_p8 }
 0x239   : > { %p1469_p5 = por %p1468_p4, %p1467_p6 }
 0x23a   : > { %p1465_p3 = pneg %p1464_p13 }
 0x23c   : > { %p1470_p0 = pnand %p1469_p5, %p1465_p3 }
 0x23e   : > { %1473 = shalt.err (!%p1470_p0)
}
 0x23f   : > { %s1545_s1 = smov 128   ;;  %s1546_s20 = smov 8  }
 0x240   : > { %1239 = dma.vmem_to_hbm [thread:$0]  (%p1886_p8), %s1802_s29, 512, %s1807_s4, %s1811_s7, %s1545_s1, %s1545_s1, %s1546_s20  }
 0x241 PF: > { %p1257_p9 = scmp.ge.s32.totalorder %s1532_s17, 2  ;;  %s940_s22 = sand.u32 1, %s1512_s12  }
 0x242   : > { %p1887_p2 = scmp.ne.s32.totalorder %s1873_s26, 0  ;;  %s941_s23 = scalar_lea.sflag [#allocation4], %s940_s22 }
 0x244   : > { %p1252_p12 = pnand %p1257_p9, %p1887_p2 }
 0x246   : > { %p1253_p1 = pneg %p1252_p12 }
 0x248   : > { %1507 = dma.done.wait (%p1253_p1), %s941_s23, 512  }
 0x249   : > { %1509 = vsyncadd (%p1253_p1), %s941_s23, 4294966784  ;;  %s18_s17 = sadd.s32 1, %s1532_s17   ;;  %s1888_s25 = sld [smem:[#allocation12_spill]] }
 0x24a   : > { %p15_p7 = scmp.ge.s32.totalorder %s18_s17, 4   ;;  %s1889_s12 = smov %s1516_s13 }
 0x24b   : > { %s1890_s13 = smov %s1520_s14  ;;  %s1891_s14 = smov %s1629_s27 }
 0x24c   : > { %s1892_s15 = smov %s1528_s16  ;;  %17 = sbr.rel (!%p15_p7) target bundleno = 8 (0x8), region = 82 }
 0x24f   : > { %s1893_s16 = smov %s1888_s25 }
 0x251   :  { %946 = vsyncpa [#allocation3], 1 }
 0x252   :  { %948 = vsyncpa [#allocation3 + $0x1], 1 }
 0x253   :  { %949 = vsyncpa [#allocation6], 1 }
 0x254   :  { %950 = vsyncpa [#allocation4], 1 }
 0x255   :  { %952 = vsyncpa [#allocation4 + $0x1], 1 }

// kernel: tpu_custom_call.1
= control target key start
LH: loop header
LB: loop body
LE: loop exit
PB: predicated region body
PF: predicated region fallthrough
CT: control target
= control target key end

     0   :  { %8 = vsyncpa [#allocation3], 0  ;;  %s1998_s0 = inlined_call_operand.hbm [shape: f32[2,16,128], index: 0, kind: input, shape index: {}]   ;;  %s1999_s1 = inlined_call_operand.hbm [shape: bf16[2,2,384,128], index: 1, kind: input, shape index: {}]   ;;  %s2000_s2 = inlined_call_operand.hbm [shape: f32[2,2,1,128], index: 2, kind: input, shape index: {}]   ;;  %s2001_s3 = inlined_call_operand.hbm [shape: f32[2,2,16,128], index: 3, kind: output, shape index: {}]  }
   0x1   :  { %9 = vsyncpa [#allocation6], 0 }
   0x2   :  { %11 = vsyncpa [#allocation6 + $0x1], 0 }
   0x3   :  { %12 = vsyncpa [#allocation4], 0 }
   0x4   :  { %14 = vsyncpa [#allocation4 + $0x1], 0  ;;  %s1673_s12 = smov 0   ;;  %s1675_s13 = smov 0  }
   0x5   :  { %s1677_s14 = smov 0   ;;  %s1679_s15 = smov 0  }
   0x6   :  { %s1681_s16 = smov 0   ;;  %s1683_s17 = smov 0  }
   0x7 LB: > { %s32_s18 = sadd.s32 1, %s1634_s16  ;;  %s65_s19 = sadd.s32 1, %s1626_s14  ;;  %s1638_s17 = sphi %s1683_s17, %s20_s17   ;;  %s1634_s16 = sphi %s1681_s16, %s2022_s16   ;;  %s1630_s15 = sphi %s1679_s15, %s2021_s15   ;;  %s1626_s14 = sphi %s1677_s14, %s2020_s14   ;;  %s1622_s13 = sphi %s1675_s13, %s2019_s13   ;;  %s1618_s12 = sphi %s1673_s12, %s2018_s12  }
   0x8   : > { %p34_p0 = scmp.ge.s32.totalorder %s32_s18, 2  ;;  %p72_p1 = scmp.ne.s32.totalorder %s1626_s14, %s1622_s13 }
   0x9   : > { %p73_p2 = scmp.eq.s32.totalorder %s1638_s17, 0  ;;  %p1363_p5 = scmp.lt.s32.totalorder %s1638_s17, 2 }
   0xa   : > { %s2024_s18 = smov (%p34_p0, %s32_s18), 0  ;;  %s173_s21 = sand.u32 1, %s1638_s17  }
   0xb   : > { %p74_p4 = por %p73_p2, %p72_p1  ;;  %s62_s20 = ssub.s32 %s1634_s16, %s2024_s18 }
   0xc   : > { %p63_p6 = scmp.eq.s32.totalorder %s62_s20, 0  ;;  %s175_s22 = sand.u32 1, %s1626_s14  }
   0xd   : > { %s1335_s23 = smul.u32 6144, %s1634_s16  ;;  %p1726_p7 = pnand %p1363_p5, %p74_p4 }
   0xe   : > { %s1721_s24 = scalar_select %p63_p6, %s1626_s14, %s65_s19  }
   0xf   : > { %s1334_s25 = smul.u32 384, %s175_s22  ;;  %s183_s28 = scalar_lea.hbm %s1999_s1, %s1335_s23 }
  0x10   : > { %s1730_s5 = sshll.u32 %s175_s22, 1  ;;  %s1732_s6 = scalar_lea.sflag [#allocation6], %s173_s21 }
  0x11   : > { %s177_s30 = scalar_lea.vmem [#allocation5], %s1334_s25  ;;  %p2002_p8 = pneg %p1726_p7 }
  0x12   : > { %s184_s4 = sshll.u32 %s177_s30, 4  ;;  %s1640_s8 = smov [#allocation5]   ;;  %s185_s4 = int_to_ptr.vmem [resolvable:$true] %s184_s4 }
  0x13   : > { %s1485_s7 = scalar_lea.vmem %s185_s4, 6144  ;;  %s1490_s9 = sshll.u32 %s1640_s8, 4  ;;  %s1491_s9 = int_to_ptr.vmem [resolvable:$false] %s1490_s9 }
  0x14   : > { %p1486_p9 = scmp.ne.s32.totalorder %s185_s4, %s1485_s7  ;;  %s1492_s10 = scalar_lea.vmem %s1491_s9, 12288 }
  0x15   : > { %p1493_p12 = scmp.lt.s32.totalorder %s185_s4, %s1491_s9  ;;  %p1494_p13 = scmp.lt.s32.totalorder %s1492_s10, %s1485_s7 }
  0x16   : > { %p1488_p10 = pnand %p1486_p9, %p2002_p8 }
  0x17   : > { %p1495_p0 = por %p1494_p13, %p1493_p12 }
  0x18   : > { %p1489_p11 = pneg %p1488_p10 }
  0x1a   : > { %p1496_p2 = pnand %p1495_p0, %p1489_p11 }
  0x1c   : > { %1499 = shalt.err (!%p1496_p2)
}
  0x1d   : > { %s1641_s11 = smov 64   ;;  %s1642_s19 = smov 4  }
  0x1e   : > { %1354 = dma.hbm_to_vmem [thread:$0]  (!%p1726_p7), %s183_s28, 6144, %s185_s4, %s1732_s6, %s1641_s11, %s1641_s11, %s1642_s19  }
  0x1f   : > { %s1743_s20 = sadd.s32 4294967295, %s1638_s17   ;;  %s1076_s21 = sadd.s32 4294967294, %s1638_s17  }
  0x20   : > { %p78_p4 = scmp.ne.s32.totalorder %s1622_s13, %s1618_s12  ;;  %p2003_p5 = scmp.eq.s32.totalorder %s1743_s20, 0 }
  0x21   : > { %p130_p6 = scmp.eq.s32.totalorder %s1743_s20, 1  ;;  %p136_p9 = scmp.eq.s32.totalorder %s1076_s21, 1 }
  0x22   : > { %p1077_p10 = scmp.ge.s32.totalorder %s1638_s17, 1  ;;  %p1753_p11 = por %p2003_p5, %p78_p4 }
  0x23   : > { %p1760_p12 = por %p130_p6, %p72_p1  ;;  %p1764_p13 = por %p136_p9, %p78_p4 }
  0x24   : > { %p143_p0 = scmp.lt.s32.totalorder %s1638_s17, 3  ;;  %s1643_s27 = smov [#allocation2]  }
  0x25   : > { %s159_s28 = sshll.u32 %s1643_s27, 4  ;;  %s1216_s30 = sshll.u32 %s1634_s16, 5  ;;  %s160_s28 = int_to_ptr.vmem [resolvable:$true] %s159_s28 }
  0x26   : > { %p1769_p2 = pnand %p1077_p10, %p143_p0  ;;  %s198_s4 = scalar_lea.vmem [#allocation7], %s1730_s5 }
  0x27   : > { %s205_s7 = sshll.u32 %s198_s4, 4  ;;  %s1786_s11 = scalar_lea.hbm %s2000_s2, %s1216_s30  ;;  %s1788_s7 = int_to_ptr.vmem [resolvable:$true] %s205_s7 }
  0x28   : > { %p1347_p3 = pneg %p1769_p2  ;;  %s1511_s19 = scalar_lea.vmem %s160_s28, 512 }
  0x29   : > { %p1512_p6 = scmp.ne.s32.totalorder %s160_s28, %s1511_s19  ;;  %p1519_p0 = scmp.lt.s32.totalorder %s160_s28, %s160_s28 }
  0x2a   : > { %p1779_p1 = pnand %p1347_p3, %p2003_p5  ;;  %p1520_p8 = scmp.lt.s32.totalorder %s1511_s19, %s1511_s19 }
  0x2c   : > { %p1502_p4 = pneg %p1779_p1  ;;  %p1521_p3 = por %p1520_p8, %p1519_p0 }
  0x2e   : > { %p1514_p9 = pnand %p1512_p6, %p1502_p4 }
  0x30   : > { %p1515_p10 = pneg %p1514_p9 }
  0x32   : > { %p1522_p5 = pnand %p1521_p3, %p1515_p10 }
  0x34   : > { %1525 = shalt.err (!%p1522_p5)
}
  0x35   : > { %s1644_s5 = smov 128   ;;  %s1645_s21 = smov 8  }
  0x36   : > { %1350 = dma.hbm_to_vmem [thread:$0]  (!%p1779_p1), %s1998_s0, 512, %s160_s28, [#allocation3], %s1644_s5, %s1644_s5, %s1645_s21  }
  0x37   : > { %s1539_s4 = scalar_lea.vmem %s1788_s7, 32  ;;  %p2010_p6 = pneg %p1726_p7 }
  0x38   : > { %p1540_p4 = scmp.ne.s32.totalorder %s1788_s7, %s1539_s4  ;;  %s1646_s9 = smov [#allocation7]  }
  0x39   : > { %s1544_s10 = sshll.u32 %s1646_s9, 4  ;;  %s1545_s10 = int_to_ptr.vmem [resolvable:$false] %s1544_s10 }
  0x3a   : > { %p1542_p9 = pnand %p1540_p4, %p2010_p6  ;;  %s1546_s19 = scalar_lea.vmem %s1545_s10, 64 }
  0x3b   : > { %p1547_p5 = scmp.lt.s32.totalorder %s1788_s7, %s1545_s10  ;;  %p1548_p10 = scmp.lt.s32.totalorder %s1546_s19, %s1539_s4 }
  0x3c   : > { %p1543_p8 = pneg %p1542_p9 }
  0x3d   : > { %p1549_p0 = por %p1548_p10, %p1547_p5 }
  0x3f   : > { %p1550_p3 = pnand %p1549_p0, %p1543_p8 }
  0x41   : > { %1553 = shalt.err (!%p1550_p3)
}
  0x42   : > { %s1647_s8 = smov 16   ;;  %s1648_s28 = smov 1  }
  0x43   : > { %1357 = dma.hbm_to_vmem [thread:$0]  (!%p1726_p7), %s1786_s11, 32, %s1788_s7, %s1732_s6, %s1647_s8, %s1647_s8, %s1648_s28  }
  0x44   : > { %217 = sbr.rel (%p1769_p2) target bundleno = 557 (0x22d), region = 32  ;;  %p2011_p1 = scmp.eq.s32.totalorder (!%p1769_p2), %s1743_s20, 0 }
  0x49   : > { %1605 = dma.done.wait (%p2011_p1), [#allocation3], 512   ;;  %p2012_p4 = pmov %p2011_p1 }
  0x4a   : > { %s223_s5 = sand.u32 1, %s1743_s20   ;;  %s1816_s21 = sand.u32 1, %s1622_s13  }
  0x4b   : > { %1607 = vsyncadd (%p2012_p4), [#allocation3], 4294966784  ;;  %s1336_s27 = smul.u32 384, %s1816_s21  ;;  %s224_s30 = scalar_lea.sflag [#allocation6], %s223_s5 }
  0x4d   : > { %s1819_s29 = scalar_lea.vmem [#allocation5], %s1336_s27 }
  0x4e   : > { %1609 = dma.done.wait (%p1753_p11), %s224_s30, 6176  }
  0x4f   : > { %1611 = vsyncadd (%p1753_p11), %s224_s30, 4294961120  ;;  %v1424_v0 = vld [vmem:[%s1819_s29 + $0x78] sm:$0xff]   ;;  %v1426_v2 = vld [vmem:[%s1819_s29 + $0x70] sm:$0xff]   ;;  %v267_v15 = vlaneseq  ;;  %vm1649_vm4 = vmmov 1   ;;  %s1086_s6 = sshll.u32 %s1816_s21, 1  ;;  %s1087_s22 = sshll.u32 %s1816_s21, 5 }
  0x50   : > { %v1425_v1 = vld [vmem:[%s1819_s29 + $0x38] sm:$0xff]   ;;  %1218 = vmatprep.subr.bf16.mxu0 %v1424_v0  ;;  %v1428_v4 = vld [vmem:[%s1819_s29 + $0x30] sm:$0xff]   ;;  %v1429_v5 = vld [vmem:[%s1819_s29 + $0x68] sm:$0xff]   ;;  %s1915_s20 = scalar_lea.vmem [#allocation7], %s1086_s6  ;;  %s263_s26 = scalar_lea.vmem [#allocation8], %s1087_s22 }
  0x51   : > { %1219 = vmatpush3.bf16.msra.mxu0 %v1425_v1  ;;  %v1427_v3 = vld [vmem:[%s1819_s29 + $0xb8] sm:$0xff]   ;;  %v1430_v6 = vld [vmem:[%s1819_s29 + $0xb0] sm:$0xff]   ;;  %v1431_v7 = vld [vmem:[%s1819_s29 + $0x28] sm:$0xff]   ;;  %v1843_v19 = vshrl.u32 %v267_v15, 7  ;;  %s957_s7 = sshll.u32 %s263_s26, 4  ;;  %s1217_s11 = sshll.u32 %s1630_s15, 9  ;;  %s1945_s7 = int_to_ptr.vmem [resolvable:$true] %s957_s7 }
  0x52   : > { %1220 = vmatprep.subr.bf16.mxu0 %v1426_v2  ;;  %1294 = vmatprep.subr.bf16.mxu1 %v1427_v3  ;;  %v1432_v8 = vld [vmem:[%s1819_s29 + $0x60] sm:$0xff]   ;;  %v1433_v9 = vld [vmem:[%s1819_s29 + $0xa8] sm:$0xff]   ;;  %v1435_v11 = vld [vmem:[%s1819_s29 + $0x58] sm:$0xff]   ;;  %s1950_s10 = scalar_lea.hbm %s2001_s3, %s1217_s11  ;;  %s941_s19 = scalar_lea.sflag [#allocation4], %s1816_s21 }
  0x53   : > { %1295 = vmatpush3.bf16.msra.mxu1 %v1427_v3  ;;  %v1434_v10 = vld [vmem:[%s1819_s29 + $0x20] sm:$0xff]   ;;  %v1437_v13 = vld [vmem:[%s1819_s29 + $0x18] sm:$0xff]   ;;  %v1438_v16 = vld [vmem:[%s1819_s29 + $0x50] sm:$0xff]   ;;  %v269_v22 = vadd.s32 8, %v1843_v19  ;;  %vm274_vm0 = vcmp.ne.s32.totalorder %v1843_v19, 0  ;;  %vm280_vm1 = vcmp.lt.s32.totalorder %v1843_v19, 1 }
  0x54   : > { %1296 = vmatprep.subr.bf16.mxu1 %v1430_v6  ;;  %v1436_v12 = vld [vmem:[%s1819_s29 + $0xa0] sm:$0xff]   ;;  %v1439_v14 = vld [vmem:[%s1819_s29 + $0x98] sm:$0xff]   ;;  %v1440_v17 = vld [vmem:[%s1819_s29 + $0x10] sm:$0xff]   ;;  %vm295_vm2 = vcmp.lt.s32.totalorder %v1843_v19, 7  ;;  %s1554_s8 = scalar_lea.vmem %s1945_s7, 512  ;;  %s1650_s15 = smov [#allocation8]  }
  0x55   : > { %1221 = vmatpush3.bf16.msra.mxu0 %v1428_v4  ;;  %v1442_v18 = vld [vmem:[%s1819_s29 + $0x90] sm:$0xff]   ;;  %v1441_v20 = vld [vmem:[%s1819_s29 + $0x48] sm:$0xff]   ;;  %v1444_v23 = vld [vmem:[%s1819_s29 + $0x40] sm:$0xff]   ;;  %vm290_vm3 = vcmp.ne.s32.totalorder %v269_v22, 15  ;;  %p1555_p7 = scmp.ne.s32.totalorder %s1945_s7, %s1554_s8  ;;  %s1558_s28 = sshll.u32 %s1650_s15, 4  ;;  %s1559_s28 = int_to_ptr.vmem [resolvable:$false] %s1558_s28 }
  0x56   : > { %1222 = vmatprep.subr.bf16.mxu0 %v1429_v5  ;;  %v1443_v21 = vld [vmem:[%s1819_s29 + $0x8] sm:$0xff]   ;;  %v270_v25 = vld [vmem:[#allocation2] sm:$0xff]  ;;  %v273_v27 = vld [vmem:[#allocation2 + $0x18] sm:$0xff]  ;;  %s1560_s5 = scalar_lea.vmem %s1559_s28, 1024  ;;  %p1561_p6 = scmp.lt.s32.totalorder %s1945_s7, %s1559_s28 }
  0x57   : > { %1297 = vmatpush3.bf16.msra.mxu1 %v1430_v6  ;;  %v1445_v24 = vld [vmem:[%s1819_s29 + $0x88] sm:$0xff]   ;;  %v276_v28 = vrot.slane %v270_v25, 7  ;;  %v291_v30 = vrot.slane %v270_v25, 1  ;;  %v1446_v32 = vld [vmem:[%s1819_s29] sm:$0xff]   ;;  %v279_v34 = vrot.slane %v273_v27, 7  ;;  %v272_v35 = vld [vmem:[#allocation2 + $0x10] sm:$0xff]  ;;  %p1556_p11 = pnand %p1555_p7, %p1760_p12  ;;  %p1562_p9 = scmp.lt.s32.totalorder %s1560_s5, %s1554_s8 }
  0x58   : > { %1298 = vmatprep.subr.bf16.mxu1 %v1433_v9  ;;  %v271_v26 = vld [vmem:[#allocation2 + $0x8] sm:$0xff]  ;;  %vm1856_vm5 = vmpackc.low %vm1649_vm4, %vm274_vm0  ;;  %v293_v37 = vrot.slane %v272_v35, 1  ;;  %v294_v39 = vrot.slane %v273_v27, 1  ;;  %v1447_v42 = vld [vmem:[%s1819_s29 + $0x80] sm:$0xff]   ;;  %v278_v51 = vrot.slane %v272_v35, 7  ;;  %v308_v52 = vpack.c.bf16 %v273_v27, %v272_v35 }
  0x59   : > { %1223 = vmatpush3.bf16.msra.mxu0 %v1431_v7  ;;  %v277_v29 = vrot.slane %v271_v26, 7  ;;  %v292_v31 = vrot.slane %v271_v26, 1  ;;  %v305_v33 = vpack.c.bf16 %v271_v26, %v270_v25  ;;  %v284_v41 = vsel %vm280_vm1, %v279_v34, %v276_v28  ;;  %v1448_v44 = vld [vmem:[%s1819_s29 + $0x138] sm:$0xff]   ;;  %vm1871_vm6 = vmpackc.low %vm290_vm3, %vm1649_vm4  ;;  %v1451_v54 = vld [vmem:[%s1819_s29 + $0x130] sm:$0xff]   ;;  %p1557_p2 = pneg %p1556_p11  ;;  %p1563_p8 = por %p1562_p9, %p1561_p6 }
  0x5a   : > { %1224 = vmatprep.subr.bf16.mxu0 %v1432_v8  ;;  %v296_v48 = vsel %vm295_vm2, %v293_v37, %v294_v39  ;;  %v299_v49 = vsel %vm295_vm2, %v294_v39, %v291_v30  ;;  %v1449_v50 = vld [vmem:[%s1819_s29 + $0x178] sm:$0xff]   ;;  %v1452_v56 = vld [vmem:[%s1819_s29 + $0x170] sm:$0xff]   ;;  %v281_v58 = vsel %vm280_vm1, %v278_v51, %v279_v34  ;;  %v1454_v61 = vld [vmem:[%s1819_s29 + $0x128] sm:$0xff]  }
  0x5b   : > { %1299 = vmatpush3.bf16.msra.mxu1 %v1433_v9  ;;  %v298_v38 = vsel %vm295_vm2, %v291_v30, %v292_v31  ;;  %v283_v40 = vsel %vm280_vm1, %v276_v28, %v277_v29  ;;  %541 = vmatprep.mubr.bf16.mxu0 %v305_v33  ;;  %v297_v43 = vsel %vm295_vm2, %v292_v31, %v293_v37  ;;  %v1450_v53 = vld [vmem:[%s1819_s29 + $0xf8] sm:$0xff]   ;;  %v1453_v57 = vld [vmem:[%s1819_s29 + $0xf0] sm:$0xff]   ;;  %v1455_v62 = vld [vmem:[%s1819_s29 + $0x168] sm:$0xff]   ;;  %p1564_p5 = pnand %p1563_p8, %p1557_p2 }
  0x5c   : > { %1300 = vmatprep.subr.bf16.mxu1 %v1436_v12  ;;  %v1120_v46 = vpack.c.bf16 %v297_v43, %v298_v38  ;;  %v1114_v47 = vpack.c.bf16 %v283_v40, %v284_v41  ;;  %v1123_v55 = vpack.c.bf16 %v299_v49, %v296_v48  ;;  %v282_v59 = vsel %vm280_vm1, %v277_v29, %v278_v51  ;;  %v1456_v63 = vld [vmem:[%s1819_s29 + $0xe8] sm:$0xff]   ;;  %v1457_v0 = vld [vmem:[%s1819_s29 + $0x120] sm:$0xff]   ;;  %v1460_v3 = vld [vmem:[%s1819_s29 + $0x118] sm:$0xff]  }
  0x5d   : > { %1225 = vmatpush3.bf16.msra.mxu0 %v1434_v10  ;;  %v1117_v60 = vpack.c.bf16 %v281_v58, %v282_v59  ;;  %v1458_v1 = vld [vmem:[%s1819_s29 + $0x160] sm:$0xff]   ;;  %v1461_v4 = vld [vmem:[%s1819_s29 + $0x158] sm:$0xff]   ;;  %v1463_v6 = vld [vmem:[%s1819_s29 + $0x110] sm:$0xff]  }
  0x5e   : > { %1226 = vmatprep.subr.bf16.mxu0 %v1435_v11  ;;  %1310 = vmatprep.mubr.msk.bf16.mxu1 %vm1871_vm6, %v1120_v46  ;;  %v1459_v2 = vld [vmem:[%s1819_s29 + $0xe0] sm:$0xff]   ;;  %v1462_v5 = vld [vmem:[%s1819_s29 + $0xd8] sm:$0xff]   ;;  %v1464_v7 = vld [vmem:[%s1819_s29 + $0x150] sm:$0xff]  }
  0x5f   : > { %1301 = vmatpush3.bf16.msra.mxu1 %v1436_v12  ;;  %v1465_v8 = vld [vmem:[%s1819_s29 + $0xd0] sm:$0xff]   ;;  %v1466_v9 = vld [vmem:[%s1819_s29 + $0x108] sm:$0xff]   ;;  %v1469_v12 = vld [vmem:[%s1819_s29 + $0x100] sm:$0xff]  }
  0x60   : > { %1302 = vmatprep.subr.bf16.mxu1 %v1439_v14  ;;  %v1467_v10 = vld [vmem:[%s1819_s29 + $0x148] sm:$0xff]  }
  0x61   : > { %1227 = vmatpush3.bf16.msra.mxu0 %v1437_v13  ;;  %v1468_v11 = vld [vmem:[%s1819_s29 + $0xc8] sm:$0xff]   ;;  %v1470_v13 = vld [vmem:[%s1819_s29 + $0x140] sm:$0xff]  }
  0x62   : > { %1228 = vmatprep.subr.bf16.mxu0 %v1438_v16 }
  0x63   : > { %1303 = vmatpush3.bf16.msra.mxu1 %v1439_v14  ;;  %v1471_v14 = vld [vmem:[%s1819_s29 + $0xc0] sm:$0xff]  }
  0x64   : > { %1304 = vmatprep.subr.bf16.mxu1 %v1442_v18 }
  0x65   : > { %1229 = vmatpush3.bf16.msra.mxu0 %v1440_v17 }
  0x66   : > { %1230 = vmatprep.subr.bf16.mxu0 %v1441_v20 }
  0x67   : > { %1305 = vmatpush3.bf16.msra.mxu1 %v1442_v18 }
  0x68   : > { %1306 = vmatprep.subr.bf16.mxu1 %v1445_v24 }
  0x69   : > { %1231 = vmatpush3.bf16.msra.mxu0 %v1443_v21  ;;  %v1088_v21 = vld [vmem:[%s1915_s20] ss:$0 sm:$0xff] }
  0x6a   : > { %1232 = vmatprep.subr.bf16.mxu0 %v1444_v23 }
  0x6b   : > { %1307 = vmatpush3.bf16.msra.mxu1 %v1445_v24 }
  0x6c   : > { %1308 = vmatprep.subr.bf16.mxu1 %v1447_v42 }
  0x6d   : > { %1233 = vmatpush3.bf16.msra.mxu0 %v1446_v32 }
  0x6e   : > { %1256 = vmatprep.subr.bf16.mxu0 %v1448_v44 }
  0x6f   : > { %1309 = vmatpush3.bf16.msra.mxu1 %v1447_v42 }
  0x70   : > { %1115 = vmatmul.mubr.msk.bf16.vlgmr.msra.gmra.mxu0 %vm1856_vm5, %v1114_v47  ;;  %1314 = vmatprep.subr.bf16.mxu1 %v1449_v50 }
  0x71   : > { %549 = vmatprep.mubr.bf16.mxu0 %v308_v52  ;;  %1257 = vmatpush3.bf16.msra.mxu0 %v1450_v53 }
  0x72   : > { %1311 = vmatmul.mubr.msk.bf16.vlgmr.msra.gmra.mxu1 %vm1871_vm6, %v1123_v55  ;;  %1258 = vmatprep.subr.bf16.mxu0 %v1451_v54 }
  0x73   : > { %1315 = vmatpush3.bf16.msra.mxu1 %v1449_v50 }
  0x74   : > { %1316 = vmatprep.subr.bf16.mxu1 %v1452_v56 }
  0x75   : > { %1259 = vmatpush3.bf16.msra.mxu0 %v1453_v57 }
  0x76   : > { %1260 = vmatprep.subr.bf16.mxu0 %v1454_v61 }
  0x77   : > { %1317 = vmatpush3.bf16.msra.mxu1 %v1452_v56 }
  0x78   : > { %1118 = vmatmul.mubr.msk.bf16.gmra.mxu0 %vm1856_vm5, %v1117_v60  ;;  %1318 = vmatprep.subr.bf16.mxu1 %v1455_v62 }
  0x79   : > { %1261 = vmatpush3.bf16.msra.mxu0 %v1456_v63 }
  0x7a   : > { %1262 = vmatprep.subr.bf16.mxu0 %v1457_v0 }
  0x7b   : > { %1319 = vmatpush3.bf16.msra.mxu1 %v1455_v62 }
  0x7c   : > { %1320 = vmatprep.subr.bf16.mxu1 %v1458_v1 }
  0x7d   : > { %1263 = vmatpush3.bf16.msra.mxu0 %v1459_v2 }
  0x7e   : > { %1264 = vmatprep.subr.bf16.mxu0 %v1460_v3 }
  0x7f   : > { %1321 = vmatpush3.bf16.msra.mxu1 %v1458_v1 }
  0x80   : > { %1322 = vmatprep.subr.bf16.mxu1 %v1461_v4 }
  0x81   : > { %1265 = vmatpush3.bf16.msra.mxu0 %v1462_v5 }
  0x82   : > { %1266 = vmatprep.subr.bf16.mxu0 %v1463_v6 }
  0x83   : > { %1323 = vmatpush3.bf16.msra.mxu1 %v1461_v4  ;;  %v1174_v4 = vld [vmem:[%s1915_s20 + $0x1] ss:$0 sm:$0xff] }
  0x84   : > { %1324 = vmatprep.subr.bf16.mxu1 %v1464_v7 }
  0x85   : > { %1267 = vmatpush3.bf16.msra.mxu0 %v1465_v8 }
  0x86   : > { %1268 = vmatprep.subr.bf16.mxu0 %v1466_v9 }
  0x87   : > { %1325 = vmatpush3.bf16.msra.mxu1 %v1464_v7 }
  0x88   : > { %1326 = vmatprep.subr.bf16.mxu1 %v1467_v10 }
  0x89   : > { %1269 = vmatpush3.bf16.msra.mxu0 %v1468_v11 }
  0x8a   : > { %1270 = vmatprep.subr.bf16.mxu0 %v1469_v12 }
  0x8b   : > { %1327 = vmatpush3.bf16.msra.mxu1 %v1467_v10 }
  0x8c   : > { %1328 = vmatprep.subr.bf16.mxu1 %v1470_v13 }
  0x8d   : > { %1271 = vmatpush3.bf16.msra.mxu0 %v1471_v14 }
  0x8f   : > { %1329 = vmatpush3.bf16.msra.mxu1 %v1470_v13 }
 0x130   : > { %v1234_v15 = vpop.f32.mrf.mxu0 }
 0x132   : > { %v1235_v16 = vpop.f32.mrf.mxu0  ;;  %v1312_v18 = vpop.f32.mrf.mxu1 }
 0x133   : > { %v1236_v17 = vadd.f32 %v1235_v16, %v1234_v15 }
 0x134   : > { %v1237_v20 = vpop.f32.mrf.mxu0  ;;  %v592_v22 = vpop.f32.mrf.mxu1 }
 0x135   : > { %v544_v25 = vadd.f32 %v1236_v17, %v1088_v21 }
 0x136   : > { %v1238_v23 = vpop.f32.mrf.mxu0  ;;  %v1313_v26 = vpop.f32.mrf.mxu1 }
 0x137   : > { %v1239_v24 = vadd.f32 %v1238_v23, %v1237_v20  ;;  %v593_v31 = vadd.f32 %v592_v22, %v544_v25 }
 0x138   : > { %v1240_v27 = vpop.f32.mrf.mxu0  ;;  %v595_v29 = vpop.f32.mrf.mxu1 }
 0x139   : > { %v547_v28 = vadd.f32 %v1239_v24, %v1088_v21  ;;  %v619_v42 = vrot.slane %v593_v31, 1  ;;  %v607_v51 = vrot.slane %v593_v31, 7 }
 0x13a   : > { %v1241_v30 = vpop.f32.mrf.mxu0 }
 0x13b   : > { %v1242_v32 = vadd.f32 %v1241_v30, %v1240_v27  ;;  %v596_v33 = vadd.f32 %v595_v29, %v547_v28 }
 0x13c   : > { %v1243_v34 = vpop.f32.mrf.mxu0 }
 0x13d   : > { %v552_v35 = vadd.f32 %v1242_v32, %v1088_v21  ;;  %v632_v37 = vpack.c.bf16 %v596_v33, %v593_v31  ;;  %v620_v40 = vrot.slane %v596_v33, 1  ;;  %v608_v46 = vrot.slane %v596_v33, 7 }
 0x13e   : > { %v1244_v38 = vpop.f32.mrf.mxu0 }
 0x13f   : > { %v601_v39 = vadd.f32 %v1312_v18, %v552_v35  ;;  %v1245_v41 = vadd.f32 %v1244_v38, %v1243_v34  ;;  %870 = vmatprep.mubr.bf16.mxu0 %v632_v37  ;;  %v625_v49 = vsel %vm295_vm2, %v619_v42, %v620_v40  ;;  %v613_v54 = vsel %vm280_vm1, %v607_v51, %v608_v46 }
 0x141   : > { %v621_v43 = vrot.slane %v601_v39, 1  ;;  %v555_v44 = vadd.f32 %v1245_v41, %v1088_v21  ;;  %v609_v61 = vrot.slane %v601_v39, 7 }
 0x143   : > { %v604_v47 = vadd.f32 %v1313_v26, %v555_v44  ;;  %v624_v48 = vsel %vm295_vm2, %v620_v40, %v621_v43  ;;  %v612_v63 = vsel %vm280_vm1, %v608_v46, %v609_v61 }
 0x144   : > { %v1206_v50 = vpack.c.bf16 %v624_v48, %v625_v49 }
 0x145   : > { %v610_v52 = vrot.slane %v604_v47, 7  ;;  %v622_v53 = vrot.slane %v604_v47, 1  ;;  %v635_v60 = vpack.c.bf16 %v604_v47, %v601_v39 }
 0x146   : > { %1330 = vmatprep.mubr.msk.bf16.mxu1 %vm1871_vm6, %v1206_v50 }
 0x147   : > { %v614_v55 = vsel %vm280_vm1, %v610_v52, %v607_v51  ;;  %v623_v56 = vsel %vm295_vm2, %v621_v43, %v622_v53  ;;  %v626_v57 = vsel %vm295_vm2, %v622_v53, %v619_v42  ;;  %v611_v62 = vsel %vm280_vm1, %v609_v61, %v610_v52 }
 0x148   : > { %v1200_v58 = vpack.c.bf16 %v613_v54, %v614_v55  ;;  %v1209_v59 = vpack.c.bf16 %v626_v57, %v623_v56  ;;  %v1203_v0 = vpack.c.bf16 %v611_v62, %v612_v63 }
 0x14a   : > { %1201 = vmatmul.mubr.msk.bf16.vlgmr.msra.gmra.mxu0 %vm1856_vm5, %v1200_v58  ;;  %1331 = vmatmul.mubr.msk.bf16.vlgmr.msra.gmra.mxu1 %vm1871_vm6, %v1209_v59 }
 0x14b   : > { %878 = vmatprep.mubr.bf16.mxu0 %v635_v60 }
 0x152   : > { %1204 = vmatmul.mubr.msk.bf16.gmra.mxu0 %vm1856_vm5, %v1203_v0 }
 0x20a   : > { %v1272_v1 = vpop.f32.mrf.mxu0  ;;  %v1332_v2 = vpop.f32.mrf.mxu1 }
 0x20c   : > { %v1273_v3 = vpop.f32.mrf.mxu0  ;;  %v921_v5 = vpop.f32.mrf.mxu1 }
 0x20d   : > { %v1274_v6 = vadd.f32 %v1273_v3, %v1272_v1 }
 0x20e   : > { %v1275_v45 = vpop.f32.mrf.mxu0  ;;  %v1333_v8 = vpop.f32.mrf.mxu1 }
 0x20f   : > { %v873_v7 = vadd.f32 %v1274_v6, %v1174_v4 }
 0x210   : > { %v1276_v9 = vpop.f32.mrf.mxu0  ;;  %v924_v36 = vpop.f32.mrf.mxu1 }
 0x211   : > { %v922_v10 = vadd.f32 %v921_v5, %v873_v7  ;;  %v1277_v11 = vadd.f32 %v1276_v9, %v1275_v45 }
 0x212   : > { %v1278_v19 = vpop.f32.mrf.mxu0 }
 0x213   : > { %936 = vst [vmem:[%s263_s26] sm:$0xff] %v922_v10  ;;  %v876_v12 = vadd.f32 %v1277_v11, %v1174_v4 }
 0x214   : > { %v1279_v13 = vpop.f32.mrf.mxu0 }
 0x215   : > { %v925_v14 = vadd.f32 %v924_v36, %v876_v12  ;;  %v1280_v15 = vadd.f32 %v1279_v13, %v1278_v19 }
 0x216   : > { %v1281_v16 = vpop.f32.mrf.mxu0 }
 0x217   : > { %937 = vst [vmem:[%s263_s26 + $0x8] sm:$0xff] %v925_v14  ;;  %v881_v17 = vadd.f32 %v1280_v15, %v1174_v4 }
 0x218   : > { %v1282_v18 = vpop.f32.mrf.mxu0 }
 0x219   : > { %v930_v20 = vadd.f32 %v1332_v2, %v881_v17  ;;  %v1283_v21 = vadd.f32 %v1282_v18, %v1281_v16 }
 0x21b   : > { %938 = vst [vmem:[%s263_s26 + $0x10] sm:$0xff] %v930_v20  ;;  %v884_v22 = vadd.f32 %v1283_v21, %v1174_v4 }
 0x21d   : > { %v933_v23 = vadd.f32 %v1333_v8, %v884_v22 }
 0x21f   : > { %939 = vst [vmem:[%s263_s26 + $0x18] sm:$0xff] %v933_v23 }
 0x220   : > { %1567 = shalt.err (!%p1564_p5)
}
 0x221   : > { %s1568_s27 = scalar_lea.hbm %s1950_s10, 512  ;;  %s1572_s6 = scalar_lea.hbm %s2001_s3, 1024 }
 0x222   : > { %p1569_p10 = scmp.ne.s32.totalorder %s1950_s10, %s1568_s27  ;;  %p1573_p1 = scmp.lt.s32.totalorder %s1950_s10, %s2001_s3 }
 0x223   : > { %p1574_p4 = scmp.lt.s32.totalorder %s1572_s6, %s1568_s27 }
 0x224   : > { %p1570_p0 = pnand %p1569_p10, %p1760_p12 }
 0x225   : > { %p1575_p7 = por %p1574_p4, %p1573_p1 }
 0x226   : > { %p1571_p3 = pneg %p1570_p0 }
 0x228   : > { %p1576_p11 = pnand %p1575_p7, %p1571_p3 }
 0x22a   : > { %1579 = shalt.err (!%p1576_p11)
}
 0x22b   : > { %s1651_s26 = smov 128   ;;  %s1652_s11 = smov 8  }
 0x22c   : > { %1345 = dma.vmem_to_hbm [thread:$0]  (%p1760_p12), %s1945_s7, 512, %s1950_s10, %s941_s19, %s1651_s26, %s1651_s26, %s1652_s11  }
 0x22d PF: > { %s972_s4 = sand.u32 1, %s1618_s12   ;;  %p2017_p2 = scmp.ge.s32.totalorder %s1638_s17, 2 }
 0x22e   : > { %s973_s9 = scalar_lea.sflag [#allocation4], %s972_s4 }
 0x22f   : > { %p1359_p6 = pnand %p2017_p2, %p1764_p13 }
 0x231   : > { %p1360_p9 = pneg %p1359_p6 }
 0x233   : > { %1613 = dma.done.wait (%p1360_p9), %s973_s9, 512  }
 0x234   : > { %1615 = vsyncadd (%p1360_p9), %s973_s9, 4294966784  ;;  %s20_s17 = sadd.s32 1, %s1638_s17   ;;  %s2018_s12 = smov %s1622_s13 }
 0x235   : > { %p17_p8 = scmp.ge.s32.totalorder %s20_s17, 4   ;;  %s2019_s13 = smov %s1626_s14 }
 0x236   : > { %s2020_s14 = smov %s1721_s24  ;;  %s2021_s15 = smov %s1634_s16 }
 0x237   : > { %s2022_s16 = smov %s2024_s18  ;;  %19 = sbr.rel (!%p17_p8) target bundleno = 7 (0x7), region = 96 }
 0x23c   :  { %978 = vsyncpa [#allocation3], 1 }
 0x23d   :  { %980 = vsyncpa [#allocation3 + $0x1], 1 }
 0x23e   :  { %981 = vsyncpa [#allocation6], 1 }
 0x23f   :  { %983 = vsyncpa [#allocation6 + $0x1], 1 }
 0x240   :  { %984 = vsyncpa [#allocation4], 1 }
 0x241   :  { %986 = vsyncpa [#allocation4 + $0x1], 1 }

</bundles_post_ra>
